<compile_context>
chip_gen: v7x
topology: tpu7x:2x2x1
jax: 0.10.0
libtpu: 0.0.40
codegen_flags: <defaults>
</compile_context>

<pallas_src>
import functools

import jax
import jax.numpy as jnp
from jax.experimental import pallas as pl
from jax.experimental.pallas import tpu as pltpu

IM_DIM = 784          # 28 * 28 flattened MNIST image
K_PAD = 896           # 7 * 128: lane-aligned padding of the input feature dim
HIDDEN = 128          # hidden_dim in the PyTorch module
SUB = 16              # sublane granularity for bf16 batch tiles


def _leaky_relu(x, slope=0.2):
    return jnp.where(x > 0, x, slope * x)


def _round_up(n, m):
    return ((n + m - 1) // m) * m


def disc_kernel(x_ref,
                w1_ref, b1_ref,
                w2_ref, b2_ref,
                w3_ref, b3_ref,
                w4_ref, b4_ref,
                o_ref):
    """Full MLP forward for one batch tile; all weights resident in VMEM.

    Matmul operands are bf16 (MXU-native); accumulation, bias add and
    LeakyReLU are f32.  The last (128 -> 1) layer runs on the VPU.
    """
    x = x_ref[...]                                                     # (tb, 896) bf16

    h = jnp.dot(x, w1_ref[...], preferred_element_type=jnp.float32)   # (tb, 512) f32
    h = _leaky_relu(h + b1_ref[...])

    h = jnp.dot(h.astype(jnp.bfloat16), w2_ref[...],
                preferred_element_type=jnp.float32)                   # (tb, 256) f32
    h = _leaky_relu(h + b2_ref[...])

    h = jnp.dot(h.astype(jnp.bfloat16), w3_ref[...],
                preferred_element_type=jnp.float32)                   # (tb, 128) f32
    h = _leaky_relu(h + b3_ref[...])

    # Final Linear(128 -> 1): an N=1 matmul wastes 127/128 MXU lanes, so do a
    # broadcast-multiply + lane reduction on the VPU/XLU instead.
    out = jnp.sum(h * w4_ref[...], axis=-1, keepdims=True) + b4_ref[...]
    o_ref[...] = out.astype(o_ref.dtype)


@functools.partial(jax.jit, static_argnames=("block_b",))
def discriminator_forward(x, params, *, block_b=256):
    """x: (B, 784) float32. params: dict of (in, out) f32 weights, (1, out) biases.

    block_b: target batch tile.  Default 256 targets v6e/v7x MXUs; pass 128 on
    v5e if desired.  Small batches are padded to the sublane granularity.
    """
    B, D = x.shape
    assert D == IM_DIM

    # --- pick the batch tile -------------------------------------------------
    tb = max(SUB, min(_round_up(block_b, SUB), _round_up(B, SUB)))
    # Keep >= 2 grid steps when the batch allows it so both v7x TensorCores
    # get work (the grid axis is marked "parallel").
    if B > SUB and _round_up(B, tb) // tb < 2:
        tb = max(SUB, _round_up(pl.cdiv(B, 2), SUB))
    B_pad = _round_up(B, tb)
    grid = (B_pad // tb,)

    # --- layout / dtype plumbing (once, under jit) ---------------------------
    # Pad features 784 -> 896 and the batch to a tile multiple; cast matmul
    # inputs to bf16, keep biases and the final 128->1 row in f32.
    xp = jnp.pad(x, ((0, B_pad - B), (0, K_PAD - D))).astype(jnp.bfloat16)
    w1 = jnp.pad(params["w1"], ((0, K_PAD - IM_DIM), (0, 0))).astype(jnp.bfloat16)
    w2 = params["w2"].astype(jnp.bfloat16)
    w3 = params["w3"].astype(jnp.bfloat16)
    w4 = params["w4"].reshape(1, HIDDEN).astype(jnp.float32)     # (1, 128) row
    b1 = params["b1"].astype(jnp.float32)
    b2 = params["b2"].astype(jnp.float32)
    b3 = params["b3"].astype(jnp.float32)
    b4 = params["b4"].astype(jnp.float32)

    def full_spec(arr):
        # Grid-invariant block: whole array, same block every step.
        return pl.BlockSpec(arr.shape, lambda i: (0, 0))

    out = pl.pallas_call(
        disc_kernel,
        out_shape=jax.ShapeDtypeStruct((B_pad, 1), jnp.float32),
        grid_spec=pltpu.PrefetchScalarGridSpec(
            num_scalar_prefetch=0,
            grid=grid,
            in_specs=[
                pl.BlockSpec((tb, K_PAD), lambda i: (i, 0)),
                full_spec(w1), full_spec(b1),
                full_spec(w2), full_spec(b2),
                full_spec(w3), full_spec(b3),
                full_spec(w4), full_spec(b4),
            ],
            out_specs=pl.BlockSpec((tb, 1), lambda i: (i, 0)),
        ),
        compiler_params=pltpu.CompilerParams(
            dimension_semantics=("parallel",),
        ),
    )(xp, w1, b1, w2, b2, w3, b3, w4, b4)

    return out[:B]


def init_params(key, im_dim=IM_DIM, hidden_dim=HIDDEN):
    """Deterministic init mimicking nn.Linear default (U(-1/sqrt(fan_in), +))."""
    dims = [im_dim, hidden_dim * 4, hidden_dim * 2, hidden_dim, 1]
    params = {}
    for idx, (fan_in, fan_out) in enumerate(zip(dims[:-1], dims[1:]), start=1):
        key, kw, kb = jax.random.split(key, 3)
        bound = 1.0 / (fan_in ** 0.5)
        params[f"w{idx}"] = jax.random.uniform(
            kw, (fan_in, fan_out), jnp.float32, -bound, bound)
        params[f"b{idx}"] = jax.random.uniform(
            kb, (1, fan_out), jnp.float32, -bound, bound)
    return params


def reference_forward(x, params):
    """Pure-JAX f32 reference matching the PyTorch forward."""
    h = x
    for idx in range(1, 4):
        h = h @ params[f"w{idx}"] + params[f"b{idx}"]
        h = jnp.where(h > 0, h, 0.2 * h)
    return h @ params["w4"] + params["b4"]


if __name__ == "__main__":
    key = jax.random.PRNGKey(0)
    kp, kx = jax.random.split(key)

    params = init_params(kp)
    batch = 48   # small; exercises batch padding and a 2-step parallel grid
    x = jax.random.normal(kx, (batch, IM_DIM), jnp.float32)

    out = discriminator_forward(x, params)
    out = jax.block_until_ready(out)

    ref = reference_forward(x, params)
    assert out.shape == (batch, 1)
    # bf16 matmul inputs (f32 accumulation) -> looser tolerance than pure f32.
    assert jnp.allclose(out, ref, atol=2e-2, rtol=2e-2), "mismatch vs reference"

    print("KERNEL_OK")
</pallas_src>

<mosaic_0001>
module attributes {stable_mosaic.version = 11 : i64} {
  func.func @disc_kernel(%arg0: i32, %arg1: memref<32x896xbf16, #tpu.memory_space<vmem>>, %arg2: memref<896x512xbf16, #tpu.memory_space<vmem>>, %arg3: memref<1x512xf32, #tpu.memory_space<vmem>>, %arg4: memref<512x256xbf16, #tpu.memory_space<vmem>>, %arg5: memref<1x256xf32, #tpu.memory_space<vmem>>, %arg6: memref<256x128xbf16, #tpu.memory_space<vmem>>, %arg7: memref<1x128xf32, #tpu.memory_space<vmem>>, %arg8: memref<1x128xf32, #tpu.memory_space<vmem>>, %arg9: memref<1x1xf32, #tpu.memory_space<vmem>>, %arg10: memref<32x1xf32, #tpu.memory_space<vmem>>) attributes {dimension_semantics = [#tpu.dimension_semantics<parallel>], iteration_bounds = array<i64: 2>, scalar_prefetch = 0 : i64, scratch_operands = 0 : i64, tpu.core_type = #tpu.core_type<tc>, window_params = [{transform_indices = @transform_0, window_bounds = array<i64: 32, 896>}, {pipeline_mode = #tpu.pipeline_mode<synchronous>, transform_indices = @transform_1, window_bounds = array<i64: 896, 512>}, {pipeline_mode = #tpu.pipeline_mode<synchronous>, transform_indices = @transform_2, window_bounds = array<i64: 1, 512>}, {pipeline_mode = #tpu.pipeline_mode<synchronous>, transform_indices = @transform_3, window_bounds = array<i64: 512, 256>}, {pipeline_mode = #tpu.pipeline_mode<synchronous>, transform_indices = @transform_4, window_bounds = array<i64: 1, 256>}, {pipeline_mode = #tpu.pipeline_mode<synchronous>, transform_indices = @transform_5, window_bounds = array<i64: 256, 128>}, {pipeline_mode = #tpu.pipeline_mode<synchronous>, transform_indices = @transform_6, window_bounds = array<i64: 1, 128>}, {pipeline_mode = #tpu.pipeline_mode<synchronous>, transform_indices = @transform_7, window_bounds = array<i64: 1, 128>}, {pipeline_mode = #tpu.pipeline_mode<synchronous>, transform_indices = @transform_8, window_bounds = array<i64: 1, 1>}, {transform_indices = @transform_9, window_bounds = array<i64: 32, 1>}]} {
    %c0 = arith.constant 0 : index
    %c0_0 = arith.constant 0 : index
    %0 = vector.load %arg1[%c0, %c0_0] : memref<32x896xbf16, #tpu.memory_space<vmem>>, vector<32x896xbf16>
    %c0_1 = arith.constant 0 : index
    %c0_2 = arith.constant 0 : index
    %1 = vector.load %arg2[%c0_1, %c0_2] : memref<896x512xbf16, #tpu.memory_space<vmem>>, vector<896x512xbf16>
    %cst = arith.constant dense<0.000000e+00> : vector<32x512xf32>
    %2 = tpu.matmul %0, %1, %cst {dimension_numbers = #tpu.dot_dimension_numbers<[1], [0], [0], [1], [0, 0, 1, 1], [], []>} : vector<32x896xbf16>, vector<896x512xbf16>, vector<32x512xf32> -> vector<32x512xf32>
    %c0_3 = arith.constant 0 : index
    %c0_4 = arith.constant 0 : index
    %3 = vector.load %arg3[%c0_3, %c0_4] : memref<1x512xf32, #tpu.memory_space<vmem>>, vector<1x512xf32>
    %4 = vector.broadcast %3 : vector<1x512xf32> to vector<32x512xf32>
    %5 = arith.addf %2, %4 : vector<32x512xf32>
    %cst_5 = arith.constant 0.000000e+00 : f32
    %6 = vector.broadcast %cst_5 : f32 to vector<32x512xf32>
    %7 = arith.cmpf ogt, %5, %6 : vector<32x512xf32>
    %cst_6 = arith.constant 2.000000e-01 : f32
    %8 = vector.broadcast %cst_6 : f32 to vector<32x512xf32>
    %9 = arith.mulf %8, %5 : vector<32x512xf32>
    %10 = arith.select %7, %5, %9 : vector<32x512xi1>, vector<32x512xf32>
    %11 = arith.truncf %10 : vector<32x512xf32> to vector<32x512xbf16>
    %c0_7 = arith.constant 0 : index
    %c0_8 = arith.constant 0 : index
    %12 = vector.load %arg4[%c0_7, %c0_8] : memref<512x256xbf16, #tpu.memory_space<vmem>>, vector<512x256xbf16>
    %cst_9 = arith.constant dense<0.000000e+00> : vector<32x256xf32>
    %13 = tpu.matmul %11, %12, %cst_9 {dimension_numbers = #tpu.dot_dimension_numbers<[1], [0], [0], [1], [0, 0, 1, 1], [], []>} : vector<32x512xbf16>, vector<512x256xbf16>, vector<32x256xf32> -> vector<32x256xf32>
    %c0_10 = arith.constant 0 : index
    %c0_11 = arith.constant 0 : index
    %14 = vector.load %arg5[%c0_10, %c0_11] : memref<1x256xf32, #tpu.memory_space<vmem>>, vector<1x256xf32>
    %15 = vector.broadcast %14 : vector<1x256xf32> to vector<32x256xf32>
    %16 = arith.addf %13, %15 : vector<32x256xf32>
    %cst_12 = arith.constant 0.000000e+00 : f32
    %17 = vector.broadcast %cst_12 : f32 to vector<32x256xf32>
    %18 = arith.cmpf ogt, %16, %17 : vector<32x256xf32>
    %cst_13 = arith.constant 2.000000e-01 : f32
    %19 = vector.broadcast %cst_13 : f32 to vector<32x256xf32>
    %20 = arith.mulf %19, %16 : vector<32x256xf32>
    %21 = arith.select %18, %16, %20 : vector<32x256xi1>, vector<32x256xf32>
    %22 = arith.truncf %21 : vector<32x256xf32> to vector<32x256xbf16>
    %c0_14 = arith.constant 0 : index
    %c0_15 = arith.constant 0 : index
    %23 = vector.load %arg6[%c0_14, %c0_15] : memref<256x128xbf16, #tpu.memory_space<vmem>>, vector<256x128xbf16>
    %cst_16 = arith.constant dense<0.000000e+00> : vector<32x128xf32>
    %24 = tpu.matmul %22, %23, %cst_16 {dimension_numbers = #tpu.dot_dimension_numbers<[1], [0], [0], [1], [0, 0, 1, 1], [], []>} : vector<32x256xbf16>, vector<256x128xbf16>, vector<32x128xf32> -> vector<32x128xf32>
    %c0_17 = arith.constant 0 : index
    %c0_18 = arith.constant 0 : index
    %25 = vector.load %arg7[%c0_17, %c0_18] : memref<1x128xf32, #tpu.memory_space<vmem>>, vector<1x128xf32>
    %26 = vector.broadcast %25 : vector<1x128xf32> to vector<32x128xf32>
    %27 = arith.addf %24, %26 : vector<32x128xf32>
    %cst_19 = arith.constant 0.000000e+00 : f32
    %28 = vector.broadcast %cst_19 : f32 to vector<32x128xf32>
    %29 = arith.cmpf ogt, %27, %28 : vector<32x128xf32>
    %cst_20 = arith.constant 2.000000e-01 : f32
    %30 = vector.broadcast %cst_20 : f32 to vector<32x128xf32>
    %31 = arith.mulf %30, %27 : vector<32x128xf32>
    %32 = arith.select %29, %27, %31 : vector<32x128xi1>, vector<32x128xf32>
    %c0_21 = arith.constant 0 : index
    %c0_22 = arith.constant 0 : index
    %33 = vector.load %arg8[%c0_21, %c0_22] : memref<1x128xf32, #tpu.memory_space<vmem>>, vector<1x128xf32>
    %34 = vector.broadcast %33 : vector<1x128xf32> to vector<32x128xf32>
    %35 = arith.mulf %32, %34 : vector<32x128xf32>
    %cst_23 = arith.constant dense<0.000000e+00> : vector<32xf32>
    %36 = vector.multi_reduction <add>, %35, %cst_23 [1] : vector<32x128xf32> to vector<32xf32>
    %37 = vector.shape_cast %36 : vector<32xf32> to vector<32x1xf32>
    %c0_24 = arith.constant 0 : index
    %c0_25 = arith.constant 0 : index
    %38 = vector.load %arg9[%c0_24, %c0_25] : memref<1x1xf32, #tpu.memory_space<vmem>>, vector<1x1xf32>
    %39 = vector.broadcast %38 : vector<1x1xf32> to vector<32x1xf32>
    %40 = arith.addf %37, %39 : vector<32x1xf32>
    %c0_26 = arith.constant 0 : index
    %c0_27 = arith.constant 0 : index
    %41 = vector.load %arg10[%c0_26, %c0_27] : memref<32x1xf32, #tpu.memory_space<vmem>>, vector<32x1xf32>
    tpu.vector_store %arg10[%c0_26, %c0_27], %40 {strides = array<i32>} : memref<32x1xf32, #tpu.memory_space<vmem>>, vector<32x1xf32>,
    return
  }
  func.func @transform_0(%arg0: i32) -> (i32, i32) {
    %c0_i32 = arith.constant 0 : i32
    %c0_i32_0 = arith.constant 0 : i32
    return %arg0, %c0_i32 : i32, i32
  }
  func.func @transform_1(%arg0: i32) -> (i32, i32) {
    %c0_i32 = arith.constant 0 : i32
    %c0_i32_0 = arith.constant 0 : i32
    %c0_i32_1 = arith.constant 0 : i32
    return %c0_i32, %c0_i32_0 : i32, i32
  }
  func.func @transform_2(%arg0: i32) -> (i32, i32) {
    %c0_i32 = arith.constant 0 : i32
    %c0_i32_0 = arith.constant 0 : i32
    %c0_i32_1 = arith.constant 0 : i32
    return %c0_i32, %c0_i32_0 : i32, i32
  }
  func.func @transform_3(%arg0: i32) -> (i32, i32) {
    %c0_i32 = arith.constant 0 : i32
    %c0_i32_0 = arith.constant 0 : i32
    %c0_i32_1 = arith.constant 0 : i32
    return %c0_i32, %c0_i32_0 : i32, i32
  }
  func.func @transform_4(%arg0: i32) -> (i32, i32) {
    %c0_i32 = arith.constant 0 : i32
    %c0_i32_0 = arith.constant 0 : i32
    %c0_i32_1 = arith.constant 0 : i32
    return %c0_i32, %c0_i32_0 : i32, i32
  }
  func.func @transform_5(%arg0: i32) -> (i32, i32) {
    %c0_i32 = arith.constant 0 : i32
    %c0_i32_0 = arith.constant 0 : i32
    %c0_i32_1 = arith.constant 0 : i32
    return %c0_i32, %c0_i32_0 : i32, i32
  }
  func.func @transform_6(%arg0: i32) -> (i32, i32) {
    %c0_i32 = arith.constant 0 : i32
    %c0_i32_0 = arith.constant 0 : i32
    %c0_i32_1 = arith.constant 0 : i32
    return %c0_i32, %c0_i32_0 : i32, i32
  }
  func.func @transform_7(%arg0: i32) -> (i32, i32) {
    %c0_i32 = arith.constant 0 : i32
    %c0_i32_0 = arith.constant 0 : i32
    %c0_i32_1 = arith.constant 0 : i32
    return %c0_i32, %c0_i32_0 : i32, i32
  }
  func.func @transform_8(%arg0: i32) -> (i32, i32) {
    %c0_i32 = arith.constant 0 : i32
    %c0_i32_0 = arith.constant 0 : i32
    %c0_i32_1 = arith.constant 0 : i32
    return %c0_i32, %c0_i32_0 : i32, i32
  }
  func.func @transform_9(%arg0: i32) -> (i32, i32) {
    %c0_i32 = arith.constant 0 : i32
    %c0_i32_0 = arith.constant 0 : i32
    return %arg0, %c0_i32 : i32, i32
  }
}

</mosaic_0001>

<bundles_post_ra>
// kernel: discriminator_forward.1
= control target key start
LH: loop header
LB: loop body
LE: loop exit
PB: predicated region body
PF: predicated region fallthrough
CT: control target
= control target key end

     0   :  { %s4090_s11 = smov 0   ;;  %s5170_s0 = inlined_call_operand.vmem [shape: bf16[64,896], index: 0, kind: input, shape index: {}]   ;;  %s5171_s1 = inlined_call_operand.vmem [shape: bf16[896,512], index: 1, kind: input, shape index: {}]   ;;  %s5172_s2 = inlined_call_operand.vmem [shape: f32[1,512], index: 2, kind: input, shape index: {}]   ;;  %s5173_s3 = inlined_call_operand.vmem [shape: bf16[512,256], index: 3, kind: input, shape index: {}]   ;;  %s5174_s4 = inlined_call_operand.vmem [shape: f32[1,256], index: 4, kind: input, shape index: {}]   ;;  %s5175_s5 = inlined_call_operand.vmem [shape: bf16[256,128], index: 5, kind: input, shape index: {}]   ;;  %s5176_s6 = inlined_call_operand.vmem [shape: f32[1,128], index: 6, kind: input, shape index: {}]   ;;  %s5177_s7 = inlined_call_operand.vmem [shape: f32[1,128], index: 7, kind: input, shape index: {}]   ;;  %s5178_s8 = inlined_call_operand.<no memory space> [shape: f32[1,1], index: 8, kind: input, shape index: {}]   ;;  %s5179_s9 = inlined_call_operand.vmem [shape: f32[64,1], index: 9, kind: output, shape index: {}]  }
   0x1   :  { %v14_v0 = vstv %s5178_s8 }
   0x2   :  { %15 = vst [vmem:[#allocation2] sm:$0x1] %v14_v0 }
   0x3 LB: > { %s3093_s12 = sadd.s32 4294967295, %s4034_s11   ;;  %p3097_p0 = scmp.ge.s32.totalorder %s4034_s11, 1  ;;  %s4034_s11 = sphi %s4090_s11, %s21_s11  }
   0x4   : > { %p291_p1 = scmp.lt.s32.totalorder %s4034_s11, 3 }
   0x6   : > { %p292_p2 = pnand %p3097_p0, %p291_p1 }
   0x7   : > { %v3559_v1 = vld [vmem:[%s5171_s1 + $0x4] ss:$16 sps:$4 sm:$0xff] (!%p292_p2)   ;;  %v3563_v3 = vld [vmem:[%s5171_s1] ss:$16 sps:$4 sm:$0xff] (!%p292_p2)   ;;  %s3098_s13 = sshll.u32 (!%p292_p2), %s3093_s12, 2 }
   0x8   : > { %295 = sbr.rel (%p292_p2) target bundleno = 1121 (0x461), region = 56  ;;  %v3561_v2 = vld [vmem:[%s5171_s1 + $0x204] ss:$16 sps:$4 sm:$0xff] (!%p292_p2)   ;;  %1796 = vmatprep.subr.bf16.mxu1 (!%p292_p2), %v3559_v1  ;;  %v3564_v4 = vld [vmem:[%s5171_s1 + $0x200] ss:$16 sps:$4 sm:$0xff] (!%p292_p2)   ;;  %p329_p3 = scmp.lt.s32.totalorder (!%p292_p2), %s3098_s13, 7 }
   0x9   : > { %1849 = vmatprep.subr.bf16.mxu0 (!%p292_p2), %v3561_v2  ;;  %v3565_v5 = vld [vmem:[%s5171_s1 + $0x24] ss:$16 sps:$4 sm:$0xff] (!%p292_p2)   ;;  %1797 = vmatpush1.bf16.msra.mxu1 (!%p292_p2), %v3563_v3  ;;  %v3569_v7 = vld [vmem:[%s5171_s1 + $0x20] ss:$16 sps:$4 sm:$0xff] (!%p292_p2)  }
   0xa   : > { %1850 = vmatpush1.bf16.msra.mxu0 (!%p292_p2), %v3564_v4  ;;  %v3567_v6 = vld [vmem:[%s5171_s1 + $0x224] ss:$16 sps:$4 sm:$0xff] (!%p292_p2)   ;;  %1798 = vmatprep.subr.bf16.mxu1 (!%p292_p2), %v3565_v5  ;;  %v3570_v8 = vld [vmem:[%s5171_s1 + $0x220] ss:$16 sps:$4 sm:$0xff] (!%p292_p2)   ;;  %v3666_v4 = vld [vmem:[%s5171_s1 + $0xc] ss:$16 sps:$4 sm:$0xff] (!%p292_p2)  }
   0xb   : > { %1851 = vmatprep.subr.bf16.mxu0 (!%p292_p2), %v3567_v6  ;;  %v3571_v9 = vld [vmem:[%s5171_s1 + $0x44] ss:$16 sps:$4 sm:$0xff] (!%p292_p2)   ;;  %v3575_v11 = vld [vmem:[%s5171_s1 + $0x40] ss:$16 sps:$4 sm:$0xff] (!%p292_p2)  }
   0xc   : > { %v3573_v10 = vld [vmem:[%s5171_s1 + $0x244] ss:$16 sps:$4 sm:$0xff] (!%p292_p2)   ;;  %v3576_v12 = vld [vmem:[%s5171_s1 + $0x240] ss:$16 sps:$4 sm:$0xff] (!%p292_p2)  }
   0xd   : > { %1799 = vmatpush1.bf16.msra.mxu1 (!%p292_p2), %v3569_v7  ;;  %v3577_v13 = vld [vmem:[%s5171_s1 + $0x64] ss:$16 sps:$4 sm:$0xff] (!%p292_p2)   ;;  %v3581_v15 = vld [vmem:[%s5171_s1 + $0x60] ss:$16 sps:$4 sm:$0xff] (!%p292_p2)  }
   0xe   : > { %1852 = vmatpush1.bf16.msra.mxu0 (!%p292_p2), %v3570_v8  ;;  %1800 = vmatprep.subr.bf16.mxu1 (!%p292_p2), %v3571_v9  ;;  %v3579_v14 = vld [vmem:[%s5171_s1 + $0x264] ss:$16 sps:$4 sm:$0xff] (!%p292_p2)   ;;  %v3582_v16 = vld [vmem:[%s5171_s1 + $0x260] ss:$16 sps:$4 sm:$0xff] (!%p292_p2)   ;;  %v3664_v8 = vld [vmem:[%s5171_s1 + $0x8] ss:$16 sps:$4 sm:$0xff] (!%p292_p2)  }
   0xf   : > { %1853 = vmatprep.subr.bf16.mxu0 %v3573_v10  ;;  %v3583_v17 = vld [vmem:[%s5171_s1 + $0x84] ss:$16 sps:$4 sm:$0xff]   ;;  %v3587_v19 = vld [vmem:[%s5171_s1 + $0x80] ss:$16 sps:$4 sm:$0xff]   ;;  %s5181_s13 = smov (!%p329_p3, %s3098_s13), 7 }
  0x10   : > { %v3585_v18 = vld [vmem:[%s5171_s1 + $0x284] ss:$16 sps:$4 sm:$0xff]   ;;  %v3588_v20 = vld [vmem:[%s5171_s1 + $0x280] ss:$16 sps:$4 sm:$0xff]   ;;  %s3549_s15 = smul.u32 28, %s5181_s13 }
  0x11   : > { %1801 = vmatpush1.bf16.msra.mxu1 %v3575_v11  ;;  %v3589_v21 = vld [vmem:[%s5171_s1 + $0xa4] ss:$16 sps:$4 sm:$0xff]   ;;  %v3593_v23 = vld [vmem:[%s5171_s1 + $0xa0] ss:$16 sps:$4 sm:$0xff]   ;;  %v3672_v10 = vld [vmem:[%s5171_s1 + $0x2c] ss:$16 sps:$4 sm:$0xff]  }
  0x12   : > { %1854 = vmatpush1.bf16.msra.mxu0 %v3576_v12  ;;  %1802 = vmatprep.subr.bf16.mxu1 %v3577_v13  ;;  %v3591_v22 = vld [vmem:[%s5171_s1 + $0x2a4] ss:$16 sps:$4 sm:$0xff]   ;;  %v3594_v24 = vld [vmem:[%s5171_s1 + $0x2a0] ss:$16 sps:$4 sm:$0xff]   ;;  %s4241_s25 = scalar_lea.vmem %s5170_s0, %s3549_s15  ;;  %v3670_v12 = vld [vmem:[%s5171_s1 + $0x28] ss:$16 sps:$4 sm:$0xff]  }
  0x13   : > { %1855 = vmatprep.subr.bf16.mxu0 %v3579_v14  ;;  %v3595_v25 = vld [vmem:[%s5171_s1 + $0xc4] ss:$16 sps:$4 sm:$0xff]   ;;  %v3599_v27 = vld [vmem:[%s5171_s1 + $0xc0] ss:$16 sps:$4 sm:$0xff]   ;;  %v4262_v52 = vld [vmem:[%s4241_s25 + $0xc] ss:$28 sps:$4 sm:$0xff]  }
  0x14   : > { %v3597_v26 = vld [vmem:[%s5171_s1 + $0x2c4] ss:$16 sps:$4 sm:$0xff]   ;;  %v3600_v28 = vld [vmem:[%s5171_s1 + $0x2c0] ss:$16 sps:$4 sm:$0xff]   ;;  %1881 = vmatprep.mubr.bf16.mxu0 %v4262_v52  ;;  %v3678_v14 = vld [vmem:[%s5171_s1 + $0x4c] ss:$16 sps:$4 sm:$0xff]  }
  0x15   : > { %1803 = vmatpush1.bf16.msra.mxu1 %v3581_v15  ;;  %v3601_v29 = vld [vmem:[%s5171_s1 + $0xe4] ss:$16 sps:$4 sm:$0xff]   ;;  %v3605_v31 = vld [vmem:[%s5171_s1 + $0xe0] ss:$16 sps:$4 sm:$0xff]  }
  0x16   : > { %1856 = vmatpush1.bf16.msra.mxu0 %v3582_v16  ;;  %1804 = vmatprep.subr.bf16.mxu1 %v3583_v17  ;;  %v3603_v30 = vld [vmem:[%s5171_s1 + $0x2e4] ss:$16 sps:$4 sm:$0xff]   ;;  %v3606_v32 = vld [vmem:[%s5171_s1 + $0x2e0] ss:$16 sps:$4 sm:$0xff]   ;;  %v3676_v16 = vld [vmem:[%s5171_s1 + $0x48] ss:$16 sps:$4 sm:$0xff]  }
  0x17   : > { %1857 = vmatprep.subr.bf16.mxu0 %v3585_v18  ;;  %v3607_v33 = vld [vmem:[%s5171_s1 + $0x104] ss:$16 sps:$4 sm:$0xff]   ;;  %v3611_v35 = vld [vmem:[%s5171_s1 + $0x100] ss:$16 sps:$4 sm:$0xff]   ;;  %v3684_v18 = vld [vmem:[%s5171_s1 + $0x6c] ss:$16 sps:$4 sm:$0xff]  }
  0x18   : > { %v3609_v34 = vld [vmem:[%s5171_s1 + $0x304] ss:$16 sps:$4 sm:$0xff]   ;;  %v3612_v36 = vld [vmem:[%s5171_s1 + $0x300] ss:$16 sps:$4 sm:$0xff]  }
  0x19   : > { %1805 = vmatpush1.bf16.msra.mxu1 %v3587_v19  ;;  %v3613_v37 = vld [vmem:[%s5171_s1 + $0x124] ss:$16 sps:$4 sm:$0xff]   ;;  %v3617_v39 = vld [vmem:[%s5171_s1 + $0x120] ss:$16 sps:$4 sm:$0xff]  }
  0x1a   : > { %1858 = vmatpush1.bf16.msra.mxu0 %v3588_v20  ;;  %1806 = vmatprep.subr.bf16.mxu1 %v3589_v21  ;;  %v3615_v38 = vld [vmem:[%s5171_s1 + $0x324] ss:$16 sps:$4 sm:$0xff]   ;;  %v3618_v40 = vld [vmem:[%s5171_s1 + $0x320] ss:$16 sps:$4 sm:$0xff]   ;;  %v3682_v20 = vld [vmem:[%s5171_s1 + $0x68] ss:$16 sps:$4 sm:$0xff]  }
  0x1b   : > { %1859 = vmatprep.subr.bf16.mxu0 %v3591_v22  ;;  %v3619_v41 = vld [vmem:[%s5171_s1 + $0x144] ss:$16 sps:$4 sm:$0xff]   ;;  %v3623_v43 = vld [vmem:[%s5171_s1 + $0x140] ss:$16 sps:$4 sm:$0xff]   ;;  %v3690_v22 = vld [vmem:[%s5171_s1 + $0x8c] ss:$16 sps:$4 sm:$0xff]  }
  0x1c   : > { %v3621_v42 = vld [vmem:[%s5171_s1 + $0x344] ss:$16 sps:$4 sm:$0xff]   ;;  %v3624_v44 = vld [vmem:[%s5171_s1 + $0x340] ss:$16 sps:$4 sm:$0xff]  }
  0x1d   : > { %1807 = vmatpush1.bf16.msra.mxu1 %v3593_v23  ;;  %v3625_v45 = vld [vmem:[%s5171_s1 + $0x164] ss:$16 sps:$4 sm:$0xff]   ;;  %v3629_v47 = vld [vmem:[%s5171_s1 + $0x160] ss:$16 sps:$4 sm:$0xff]  }
  0x1e   : > { %1860 = vmatpush1.bf16.msra.mxu0 %v3594_v24  ;;  %1808 = vmatprep.subr.bf16.mxu1 %v3595_v25  ;;  %v3627_v46 = vld [vmem:[%s5171_s1 + $0x364] ss:$16 sps:$4 sm:$0xff]   ;;  %v3630_v48 = vld [vmem:[%s5171_s1 + $0x360] ss:$16 sps:$4 sm:$0xff]   ;;  %v3688_v24 = vld [vmem:[%s5171_s1 + $0x88] ss:$16 sps:$4 sm:$0xff]  }
  0x1f   : > { %1861 = vmatprep.subr.bf16.mxu0 %v3597_v26  ;;  %v3631_v49 = vld [vmem:[%s5171_s1 + $0x184] ss:$16 sps:$4 sm:$0xff]   ;;  %v3635_v53 = vld [vmem:[%s5171_s1 + $0x180] ss:$16 sps:$4 sm:$0xff]   ;;  %v3696_v26 = vld [vmem:[%s5171_s1 + $0xac] ss:$16 sps:$4 sm:$0xff]  }
  0x20   : > { %v4256_v50 = vld [vmem:[%s4241_s25 + $0x4] ss:$28 sps:$4 sm:$0xff]  }
  0x21   : > { %1809 = vmatpush1.bf16.msra.mxu1 %v3599_v27  ;;  %v3633_v51 = vld [vmem:[%s5171_s1 + $0x384] ss:$16 sps:$4 sm:$0xff]   ;;  %1828 = vmatprep.mubr.bf16.mxu1 %v4256_v50  ;;  %v3636_v54 = vld [vmem:[%s5171_s1 + $0x380] ss:$16 sps:$4 sm:$0xff]  }
  0x22   : > { %1862 = vmatpush1.bf16.msra.mxu0 %v3600_v28  ;;  %1810 = vmatprep.subr.bf16.mxu1 %v3601_v29  ;;  %v3637_v55 = vld [vmem:[%s5171_s1 + $0x1a4] ss:$16 sps:$4 sm:$0xff]   ;;  %v3641_v57 = vld [vmem:[%s5171_s1 + $0x1a0] ss:$16 sps:$4 sm:$0xff]   ;;  %v3694_v28 = vld [vmem:[%s5171_s1 + $0xa8] ss:$16 sps:$4 sm:$0xff]  }
  0x23   : > { %1863 = vmatprep.subr.bf16.mxu0 %v3603_v30  ;;  %v3639_v56 = vld [vmem:[%s5171_s1 + $0x3a4] ss:$16 sps:$4 sm:$0xff]   ;;  %v3642_v58 = vld [vmem:[%s5171_s1 + $0x3a0] ss:$16 sps:$4 sm:$0xff]   ;;  %v4389_v30 = vld [vmem:[%s4241_s25 + $0x3c] ss:$28 sps:$4 sm:$0xff]  }
  0x24   : > { %v3643_v59 = vld [vmem:[%s5171_s1 + $0x1c4] ss:$16 sps:$4 sm:$0xff]   ;;  %v3647_v61 = vld [vmem:[%s5171_s1 + $0x1c0] ss:$16 sps:$4 sm:$0xff]  }
  0x25   : > { %1811 = vmatpush1.bf16.msra.mxu1 %v3605_v31  ;;  %v3645_v60 = vld [vmem:[%s5171_s1 + $0x3c4] ss:$16 sps:$4 sm:$0xff]   ;;  %v3648_v62 = vld [vmem:[%s5171_s1 + $0x3c0] ss:$16 sps:$4 sm:$0xff]  }
  0x26   : > { %1864 = vmatpush1.bf16.msra.mxu0 %v3606_v32  ;;  %1812 = vmatprep.subr.bf16.mxu1 %v3607_v33  ;;  %v3649_v63 = vld [vmem:[%s5171_s1 + $0x1e4] ss:$16 sps:$4 sm:$0xff]   ;;  %v3653_v1 = vld [vmem:[%s5171_s1 + $0x1e0] ss:$16 sps:$4 sm:$0xff]   ;;  %v3702_v33 = vld [vmem:[%s5171_s1 + $0xcc] ss:$16 sps:$4 sm:$0xff]  }
  0x27   : > { %1865 = vmatprep.subr.bf16.mxu0 %v3609_v34  ;;  %v3651_v0 = vld [vmem:[%s5171_s1 + $0x3e4] ss:$16 sps:$4 sm:$0xff]   ;;  %v3654_v2 = vld [vmem:[%s5171_s1 + $0x3e0] ss:$16 sps:$4 sm:$0xff]  }
  0x28   : > { %v3663_v3 = vld [vmem:[%s5171_s1 + $0x404] ss:$16 sps:$4 sm:$0xff]   ;;  %v4315_v5 = vld [vmem:[%s4241_s25] ss:$28 sps:$4 sm:$0xff]  }
  0x29   : > { %1813 = vmatpush1.bf16.msra.mxu1 %v3611_v35  ;;  %v3658_v6 = vld [vmem:[%s4241_s25 + $0x8] ss:$28 sps:$4 sm:$0xff]   ;;  %v3661_v7 = vld [vmem:[%s5171_s1 + $0x400] ss:$16 sps:$4 sm:$0xff]   ;;  %v4392_v31 = vld [vmem:[%s4241_s25 + $0x38] ss:$28 sps:$4 sm:$0xff]  }
  0x2a   : > { %1866 = vmatpush1.bf16.msra.mxu0 %v3612_v36  ;;  %1814 = vmatprep.subr.bf16.mxu1 %v3613_v37  ;;  %v3669_v9 = vld [vmem:[%s5171_s1 + $0x424] ss:$16 sps:$4 sm:$0xff]   ;;  %v3667_v11 = vld [vmem:[%s5171_s1 + $0x420] ss:$16 sps:$4 sm:$0xff]   ;;  %v3700_v35 = vld [vmem:[%s5171_s1 + $0xc8] ss:$16 sps:$4 sm:$0xff]  }
  0x2b   : > { %1867 = vmatprep.subr.bf16.mxu0 %v3615_v38  ;;  %v3675_v13 = vld [vmem:[%s5171_s1 + $0x444] ss:$16 sps:$4 sm:$0xff]   ;;  %v3673_v15 = vld [vmem:[%s5171_s1 + $0x440] ss:$16 sps:$4 sm:$0xff]   ;;  %v3708_v38 = vld [vmem:[%s5171_s1 + $0xec] ss:$16 sps:$4 sm:$0xff]  }
  0x2c   : > { %v3681_v17 = vld [vmem:[%s5171_s1 + $0x464] ss:$16 sps:$4 sm:$0xff]   ;;  %v3679_v19 = vld [vmem:[%s5171_s1 + $0x460] ss:$16 sps:$4 sm:$0xff]  }
  0x2d   : > { %1815 = vmatpush1.bf16.msra.mxu1 %v3617_v39  ;;  %v3687_v21 = vld [vmem:[%s5171_s1 + $0x484] ss:$16 sps:$4 sm:$0xff]   ;;  %v3685_v23 = vld [vmem:[%s5171_s1 + $0x480] ss:$16 sps:$4 sm:$0xff]  }
  0x2e   : > { %1868 = vmatpush1.bf16.msra.mxu0 %v3618_v40  ;;  %1816 = vmatprep.subr.bf16.mxu1 %v3619_v41  ;;  %v3693_v25 = vld [vmem:[%s5171_s1 + $0x4a4] ss:$16 sps:$4 sm:$0xff]   ;;  %v3691_v27 = vld [vmem:[%s5171_s1 + $0x4a0] ss:$16 sps:$4 sm:$0xff]   ;;  %v3706_v40 = vld [vmem:[%s5171_s1 + $0xe8] ss:$16 sps:$4 sm:$0xff]  }
  0x2f   : > { %1869 = vmatprep.subr.bf16.mxu0 %v3621_v42  ;;  %v3699_v29 = vld [vmem:[%s5171_s1 + $0x4c4] ss:$16 sps:$4 sm:$0xff]   ;;  %v3697_v34 = vld [vmem:[%s5171_s1 + $0x4c0] ss:$16 sps:$4 sm:$0xff]  }
  0x30   : > { %v4395_v32 = vld [vmem:[%s4241_s25 + $0x44] ss:$28 sps:$4 sm:$0xff]   ;;  %v4427_v41 = vld [vmem:[%s4241_s25 + $0x14] ss:$28 sps:$4 sm:$0xff]  }
  0x31   : > { %1817 = vmatpush1.bf16.msra.mxu1 %v3623_v43  ;;  %v4410_v36 = vld [vmem:[%s4241_s25 + $0x40] ss:$28 sps:$4 sm:$0xff]   ;;  %v3705_v37 = vld [vmem:[%s5171_s1 + $0x4e4] ss:$16 sps:$4 sm:$0xff]  }
  0x32   : > { %1870 = vmatpush1.bf16.msra.mxu0 %v3624_v44  ;;  %1818 = vmatprep.subr.bf16.mxu1 %v3625_v45  ;;  %v3703_v39 = vld [vmem:[%s5171_s1 + $0x4e0] ss:$16 sps:$4 sm:$0xff]   ;;  %v3711_v42 = vld [vmem:[%s5171_s1 + $0x504] ss:$16 sps:$4 sm:$0xff]   ;;  %v3714_v43 = vld [vmem:[%s5171_s1 + $0x10c] ss:$16 sps:$4 sm:$0xff]  }
  0x33   : > { %1871 = vmatprep.subr.bf16.mxu0 %v3627_v46  ;;  %v3709_v44 = vld [vmem:[%s5171_s1 + $0x500] ss:$16 sps:$4 sm:$0xff]   ;;  %v3712_v45 = vld [vmem:[%s5171_s1 + $0x108] ss:$16 sps:$4 sm:$0xff]   ;;  %v3717_v46 = vld [vmem:[%s5171_s1 + $0x524] ss:$16 sps:$4 sm:$0xff]  }
  0x35   : > { %1819 = vmatpush1.bf16.msra.mxu1 %v3629_v47  ;;  %v3720_v47 = vld [vmem:[%s5171_s1 + $0x12c] ss:$16 sps:$4 sm:$0xff]  }
  0x36   : > { %1872 = vmatpush1.bf16.msra.mxu0 %v3630_v48  ;;  %1820 = vmatprep.subr.bf16.mxu1 %v3631_v49  ;;  %v3715_v48 = vld [vmem:[%s5171_s1 + $0x520] ss:$16 sps:$4 sm:$0xff]   ;;  %v3718_v49 = vld [vmem:[%s5171_s1 + $0x128] ss:$16 sps:$4 sm:$0xff]  }
  0x37   : > { %1873 = vmatprep.subr.bf16.mxu0 %v3633_v51  ;;  %v3726_v51 = vld [vmem:[%s5171_s1 + $0x14c] ss:$16 sps:$4 sm:$0xff]  }
  0x39   : > { %1821 = vmatpush1.bf16.msra.mxu1 %v3635_v53  ;;  %v3721_v53 = vld [vmem:[%s5171_s1 + $0x540] ss:$16 sps:$4 sm:$0xff]  }
  0x3a   : > { %1874 = vmatpush1.bf16.msra.mxu0 %v3636_v54  ;;  %1822 = vmatprep.subr.bf16.mxu1 %v3637_v55  ;;  %v3724_v54 = vld [vmem:[%s5171_s1 + $0x148] ss:$16 sps:$4 sm:$0xff]   ;;  %v3729_v55 = vld [vmem:[%s5171_s1 + $0x564] ss:$16 sps:$4 sm:$0xff]  }
  0x3b   : > { %1875 = vmatprep.subr.bf16.mxu0 %v3639_v56  ;;  %v3732_v56 = vld [vmem:[%s5171_s1 + $0x16c] ss:$16 sps:$4 sm:$0xff]  }
  0x3d   : > { %1823 = vmatpush1.bf16.msra.mxu1 %v3641_v57  ;;  %v3727_v57 = vld [vmem:[%s5171_s1 + $0x560] ss:$16 sps:$4 sm:$0xff]  }
  0x3e   : > { %1876 = vmatpush1.bf16.msra.mxu0 %v3642_v58  ;;  %1824 = vmatprep.subr.bf16.mxu1 %v3643_v59  ;;  %v3730_v58 = vld [vmem:[%s5171_s1 + $0x168] ss:$16 sps:$4 sm:$0xff]   ;;  %v3735_v59 = vld [vmem:[%s5171_s1 + $0x584] ss:$16 sps:$4 sm:$0xff]  }
  0x3f   : > { %1877 = vmatprep.subr.bf16.mxu0 %v3645_v60  ;;  %v3738_v60 = vld [vmem:[%s5171_s1 + $0x18c] ss:$16 sps:$4 sm:$0xff]  }
  0x41   : > { %1825 = vmatpush1.bf16.msra.mxu1 %v3647_v61  ;;  %v3733_v61 = vld [vmem:[%s5171_s1 + $0x580] ss:$16 sps:$4 sm:$0xff]  }
  0x42   : > { %1878 = vmatpush1.bf16.msra.mxu0 %v3648_v62  ;;  %1826 = vmatprep.subr.bf16.mxu1 %v3649_v63  ;;  %v3736_v62 = vld [vmem:[%s5171_s1 + $0x188] ss:$16 sps:$4 sm:$0xff]   ;;  %v3741_v63 = vld [vmem:[%s5171_s1 + $0x5a4] ss:$16 sps:$4 sm:$0xff]  }
  0x43   : > { %1879 = vmatprep.subr.bf16.mxu0 %v3651_v0  ;;  %v3744_v0 = vld [vmem:[%s5171_s1 + $0x1ac] ss:$16 sps:$4 sm:$0xff]  }
  0x45   : > { %1827 = vmatpush1.bf16.msra.mxu1 %v3653_v1  ;;  %v3739_v1 = vld [vmem:[%s5171_s1 + $0x5a0] ss:$16 sps:$4 sm:$0xff]  }
  0x46   : > { %1880 = vmatpush1.bf16.msra.mxu0 %v3654_v2  ;;  %2008 = vmatprep.subr.bf16.mxu1 %v3666_v4  ;;  %v3742_v2 = vld [vmem:[%s5171_s1 + $0x1a8] ss:$16 sps:$4 sm:$0xff]   ;;  %v3755_v4 = vld [vmem:[%s5171_s1 + $0x1cc] ss:$16 sps:$4 sm:$0xff]  }
  0x47   : > { %1902 = vmatprep.subr.bf16.mxu0 %v3663_v3  ;;  %v3752_v3 = vld [vmem:[%s5171_s1 + $0x5c4] ss:$16 sps:$4 sm:$0xff]  }
  0x48   : > { %1829 = vmatmul.mubr.bf16.vlgmr.msra.gmra.mrb[0].mxu1 %v4315_v5 }
  0x49   : > { %1882 = vmatmul.mubr.bf16.vlgmr.msra.gmra.mrb[0].mxu0 %v3658_v6  ;;  %2009 = vmatpush1.bf16.msra.mxu1 %v3664_v8  ;;  %v3750_v6 = vld [vmem:[%s5171_s1 + $0x5c0] ss:$16 sps:$4 sm:$0xff]   ;;  %v3759_v8 = vld [vmem:[%s5171_s1 + $0x5e4] ss:$16 sps:$4 sm:$0xff]  }
  0x4a   : > { %1903 = vmatpush1.bf16.msra.mxu0 %v3661_v7  ;;  %2010 = vmatprep.subr.bf16.mxu1 %v3672_v10  ;;  %v3753_v7 = vld [vmem:[%s5171_s1 + $0x1c8] ss:$16 sps:$4 sm:$0xff]   ;;  %v3757_v10 = vld [vmem:[%s5171_s1 + $0x5e0] ss:$16 sps:$4 sm:$0xff]  }
  0x4b   : > { %1904 = vmatprep.subr.bf16.mxu0 %v3669_v9  ;;  %1838 = vmatprep.mubr.bf16.mxu1 %v4389_v30  ;;  %v3762_v9 = vld [vmem:[%s5171_s1 + $0x1ec] ss:$16 sps:$4 sm:$0xff]  }
  0x4c   : > { %1891 = vmatprep.mubr.bf16.mxu0 %v4395_v32 }
  0x4d   : > { %2011 = vmatpush1.bf16.msra.mxu1 %v3670_v12  ;;  %v3768_v12 = vld [vmem:[%s5171_s1 + $0x604] ss:$16 sps:$4 sm:$0xff]  }
  0x4e   : > { %1905 = vmatpush1.bf16.msra.mxu0 %v3667_v11  ;;  %2012 = vmatprep.subr.bf16.mxu1 %v3678_v14  ;;  %v3760_v11 = vld [vmem:[%s5171_s1 + $0x1e8] ss:$16 sps:$4 sm:$0xff]   ;;  %v4533_v14 = vld [vmem:[%s4241_s25 + $0x10] ss:$28 sps:$4 sm:$0xff]  }
  0x4f   : > { %1906 = vmatprep.subr.bf16.mxu0 %v3675_v13  ;;  %v3771_v13 = vld [vmem:[%s5171_s1 + $0x20c] ss:$16 sps:$4 sm:$0xff]  }
  0x50   : > { %1839 = vmatmul.mubr.bf16.gmra.mrb[4].mxu1 %v4392_v31 }
  0x51   : > { %2013 = vmatpush1.bf16.msra.mxu1 %v3676_v16  ;;  %1892 = vmatmul.mubr.bf16.gmra.mrb[4].mxu0 %v4410_v36  ;;  %v3769_v16 = vld [vmem:[%s5171_s1 + $0x208] ss:$16 sps:$4 sm:$0xff]  }
  0x52   : > { %1907 = vmatpush1.bf16.msra.mxu0 %v3673_v15  ;;  %2014 = vmatprep.subr.bf16.mxu1 %v3684_v18  ;;  %v3766_v15 = vld [vmem:[%s5171_s1 + $0x600] ss:$16 sps:$4 sm:$0xff]   ;;  %v3777_v18 = vld [vmem:[%s5171_s1 + $0x22c] ss:$16 sps:$4 sm:$0xff]  }
  0x53   : > { %1908 = vmatprep.subr.bf16.mxu0 %v3681_v17  ;;  %2040 = vmatprep.mubr.bf16.mxu1 %v4256_v50  ;;  %v3723_v50 = vld [vmem:[%s5171_s1 + $0x544] ss:$16 sps:$4 sm:$0xff]  }
  0x54   : > { %1934 = vmatprep.mubr.bf16.mxu0 %v4427_v41  ;;  %v3774_v17 = vld [vmem:[%s5171_s1 + $0x624] ss:$16 sps:$4 sm:$0xff]  }
  0x55   : > { %2015 = vmatpush1.bf16.msra.mxu1 %v3682_v20  ;;  %v3772_v20 = vld [vmem:[%s5171_s1 + $0x620] ss:$16 sps:$4 sm:$0xff]  }
  0x56   : > { %1909 = vmatpush1.bf16.msra.mxu0 %v3679_v19  ;;  %2016 = vmatprep.subr.bf16.mxu1 %v3690_v22  ;;  %v4548_v19 = vld [vmem:[%s4241_s25 + $0x4c] ss:$28 sps:$4 sm:$0xff]   ;;  %v3780_v22 = vld [vmem:[%s5171_s1 + $0x644] ss:$16 sps:$4 sm:$0xff]  }
  0x57   : > { %1910 = vmatprep.subr.bf16.mxu0 %v3687_v21  ;;  %v3775_v21 = vld [vmem:[%s5171_s1 + $0x228] ss:$16 sps:$4 sm:$0xff]  }
  0x59   : > { %2017 = vmatpush1.bf16.msra.mxu1 %v3688_v24  ;;  %v3778_v24 = vld [vmem:[%s5171_s1 + $0x640] ss:$16 sps:$4 sm:$0xff]  }
  0x5a   : > { %1911 = vmatpush1.bf16.msra.mxu0 %v3685_v23  ;;  %2018 = vmatprep.subr.bf16.mxu1 %v3696_v26  ;;  %v4567_v23 = vld [vmem:[%s4241_s25 + $0x48] ss:$28 sps:$4 sm:$0xff]  }
  0x5b   : > { %1912 = vmatprep.subr.bf16.mxu0 %v3693_v25  ;;  %v3781_v25 = vld [vmem:[%s5171_s1 + $0x248] ss:$16 sps:$4 sm:$0xff]   ;;  %v3786_v26 = vld [vmem:[%s5171_s1 + $0x664] ss:$16 sps:$4 sm:$0xff]  }
  0x5d   : > { %2019 = vmatpush1.bf16.msra.mxu1 %v3694_v28  ;;  %v3784_v28 = vld [vmem:[%s5171_s1 + $0x660] ss:$16 sps:$4 sm:$0xff]  }
  0x5e   : > { %1913 = vmatpush1.bf16.msra.mxu0 %v3691_v27  ;;  %2020 = vmatprep.subr.bf16.mxu1 %v3702_v33  ;;  %v3789_v27 = vld [vmem:[%s5171_s1 + $0x26c] ss:$16 sps:$4 sm:$0xff]   ;;  %v4036_v33 = vmov 0  }
  0x5f   : > { %1914 = vmatprep.subr.bf16.mxu0 %v3699_v29  ;;  %v3787_v29 = vld [vmem:[%s5171_s1 + $0x268] ss:$16 sps:$4 sm:$0xff]  }
  0x61   : > { %2021 = vmatpush1.bf16.msra.mxu1 %v3700_v35  ;;  %v3793_v35 = vld [vmem:[%s5171_s1 + $0x288] ss:$16 sps:$4 sm:$0xff]  }
  0x62   : > { %1915 = vmatpush1.bf16.msra.mxu0 %v3697_v34  ;;  %2022 = vmatprep.subr.bf16.mxu1 %v3708_v38  ;;  %v3790_v34 = vld [vmem:[%s5171_s1 + $0x680] ss:$16 sps:$4 sm:$0xff]  }
  0x63   : > { %1916 = vmatprep.subr.bf16.mxu0 %v3705_v37  ;;  %v3798_v37 = vld [vmem:[%s5171_s1 + $0x6a4] ss:$16 sps:$4 sm:$0xff]   ;;  %v3796_v38 = vld [vmem:[%s5171_s1 + $0x6a0] ss:$16 sps:$4 sm:$0xff]  }
  0x65   : > { %2023 = vmatpush1.bf16.msra.mxu1 %v3706_v40  ;;  %v3807_v40 = vld [vmem:[%s5171_s1 + $0x6c4] ss:$16 sps:$4 sm:$0xff]  }
  0x66   : > { %1917 = vmatpush1.bf16.msra.mxu0 %v3703_v39  ;;  %2024 = vmatprep.subr.bf16.mxu1 %v3714_v43  ;;  %v3799_v39 = vld [vmem:[%s5171_s1 + $0x2a8] ss:$16 sps:$4 sm:$0xff]   ;;  %v3805_v43 = vld [vmem:[%s5171_s1 + $0x6c0] ss:$16 sps:$4 sm:$0xff]  }
  0x67   : > { %1918 = vmatprep.subr.bf16.mxu0 %v3711_v42  ;;  %v3810_v42 = vld [vmem:[%s5171_s1 + $0x2cc] ss:$16 sps:$4 sm:$0xff]  }
  0x69   : > { %2025 = vmatpush1.bf16.msra.mxu1 %v3712_v45  ;;  %v3813_v45 = vld [vmem:[%s5171_s1 + $0x6e4] ss:$16 sps:$4 sm:$0xff]  }
  0x6a   : > { %1919 = vmatpush1.bf16.msra.mxu0 %v3709_v44  ;;  %2026 = vmatprep.subr.bf16.mxu1 %v3720_v47  ;;  %v3808_v44 = vld [vmem:[%s5171_s1 + $0x2c8] ss:$16 sps:$4 sm:$0xff]   ;;  %v3811_v47 = vld [vmem:[%s5171_s1 + $0x6e0] ss:$16 sps:$4 sm:$0xff]  }
  0x6b   : > { %1920 = vmatprep.subr.bf16.mxu0 %v3717_v46  ;;  %v3816_v46 = vld [vmem:[%s5171_s1 + $0x2ec] ss:$16 sps:$4 sm:$0xff]  }
  0x6d   : > { %2027 = vmatpush1.bf16.msra.mxu1 %v3718_v49  ;;  %v3820_v49 = vld [vmem:[%s5171_s1 + $0x30c] ss:$16 sps:$4 sm:$0xff]  }
  0x6e   : > { %1921 = vmatpush1.bf16.msra.mxu0 %v3715_v48  ;;  %2028 = vmatprep.subr.bf16.mxu1 %v3726_v51  ;;  %v3814_v48 = vld [vmem:[%s5171_s1 + $0x2e8] ss:$16 sps:$4 sm:$0xff]  }
  0x6f   : > { %1922 = vmatprep.subr.bf16.mxu0 %v3723_v50  ;;  %v4643_v50 = vld [vmem:[%s4241_s25 + $0x18] ss:$28 sps:$4 sm:$0xff]  }
  0x70   : > { %v3818_v51 = vld [vmem:[%s5171_s1 + $0x308] ss:$16 sps:$4 sm:$0xff]  }
  0x71   : > { %2029 = vmatpush1.bf16.msra.mxu1 %v3724_v54  ;;  %v3821_v54 = vld [vmem:[%s5171_s1 + $0x328] ss:$16 sps:$4 sm:$0xff]  }
  0x72   : > { %1923 = vmatpush1.bf16.msra.mxu0 %v3721_v53  ;;  %2030 = vmatprep.subr.bf16.mxu1 %v3732_v56  ;;  %v3823_v53 = vld [vmem:[%s5171_s1 + $0x32c] ss:$16 sps:$4 sm:$0xff]  }
  0x73   : > { %1924 = vmatprep.subr.bf16.mxu0 %v3729_v55  ;;  %v3827_v55 = vld [vmem:[%s5171_s1 + $0x34c] ss:$16 sps:$4 sm:$0xff]  }
  0x74   : > { %v4660_v56 = vld [vmem:[%s4241_s25 + $0x50] ss:$28 sps:$4 sm:$0xff]  }
  0x75   : > { %2031 = vmatpush1.bf16.msra.mxu1 %v3730_v58  ;;  %v3830_v58 = vld [vmem:[%s5171_s1 + $0x36c] ss:$16 sps:$4 sm:$0xff]  }
  0x76   : > { %1925 = vmatpush1.bf16.msra.mxu0 %v3727_v57  ;;  %2032 = vmatprep.subr.bf16.mxu1 %v3738_v60  ;;  %v3825_v57 = vld [vmem:[%s5171_s1 + $0x348] ss:$16 sps:$4 sm:$0xff]   ;;  %v3917_v60 = vld [vmem:[%s5173_s3 + $0x4] ss:$8 sps:$4 sm:$0xff]  }
  0x77   : > { %1926 = vmatprep.subr.bf16.mxu0 %v3735_v59  ;;  %v3915_v59 = vld [vmem:[%s5173_s3] ss:$8 sps:$4 sm:$0xff]  }
  0x79   : > { %2033 = vmatpush1.bf16.msra.mxu1 %v3736_v62  ;;  %v3920_v62 = vld [vmem:[%s5173_s3 + $0x14] ss:$8 sps:$4 sm:$0xff]  }
  0x7a   : > { %1927 = vmatpush1.bf16.msra.mxu0 %v3733_v61  ;;  %2034 = vmatprep.subr.bf16.mxu1 %v3744_v0  ;;  %v3828_v61 = vld [vmem:[%s5171_s1 + $0x368] ss:$16 sps:$4 sm:$0xff]  }
  0x7b   : > { %1928 = vmatprep.subr.bf16.mxu0 %v3741_v63  ;;  %v3833_v63 = vld [vmem:[%s5171_s1 + $0x38c] ss:$16 sps:$4 sm:$0xff]   ;;  %v3918_v0 = vld [vmem:[%s5173_s3 + $0x10] ss:$8 sps:$4 sm:$0xff]  }
  0x7d   : > { %2035 = vmatpush1.bf16.msra.mxu1 %v3742_v2  ;;  %v3831_v2 = vld [vmem:[%s5171_s1 + $0x388] ss:$16 sps:$4 sm:$0xff]  }
  0x7e   : > { %1929 = vmatpush1.bf16.msra.mxu0 %v3739_v1  ;;  %2036 = vmatprep.subr.bf16.mxu1 %v3755_v4  ;;  %v3923_v1 = vld [vmem:[%s5173_s3 + $0x24] ss:$8 sps:$4 sm:$0xff]   ;;  %v3921_v4 = vld [vmem:[%s5173_s3 + $0x20] ss:$8 sps:$4 sm:$0xff]  }
  0x7f   : > { %1930 = vmatprep.subr.bf16.mxu0 %v3752_v3  ;;  %v3836_v3 = vld [vmem:[%s5171_s1 + $0x3ac] ss:$16 sps:$4 sm:$0xff]  }
  0x81   : > { %2037 = vmatpush1.bf16.msra.mxu1 %v3753_v7  ;;  %v3839_v7 = vld [vmem:[%s5171_s1 + $0x3cc] ss:$16 sps:$4 sm:$0xff]  }
  0x82   : > { %1931 = vmatpush1.bf16.msra.mxu0 %v3750_v6  ;;  %2038 = vmatprep.subr.bf16.mxu1 %v3762_v9  ;;  %v3834_v6 = vld [vmem:[%s5171_s1 + $0x3a8] ss:$16 sps:$4 sm:$0xff]  }
  0x83   : > { %1932 = vmatprep.subr.bf16.mxu0 %v3759_v8  ;;  %v3926_v8 = vld [vmem:[%s5173_s3 + $0x34] ss:$8 sps:$4 sm:$0xff]   ;;  %v3924_v9 = vld [vmem:[%s5173_s3 + $0x30] ss:$8 sps:$4 sm:$0xff]  }
  0x85   : > { %2039 = vmatpush1.bf16.msra.mxu1 %v3760_v11  ;;  %v3837_v11 = vld [vmem:[%s5171_s1 + $0x3c8] ss:$16 sps:$4 sm:$0xff]  }
  0x86   : > { %1933 = vmatpush1.bf16.msra.mxu0 %v3757_v10  ;;  %2061 = vmatprep.subr.bf16.mxu1 %v3771_v13  ;;  %v3929_v10 = vld [vmem:[%s5173_s3 + $0x44] ss:$8 sps:$4 sm:$0xff]   ;;  %v3927_v13 = vld [vmem:[%s5173_s3 + $0x40] ss:$8 sps:$4 sm:$0xff]  }
  0x87   : > { %1955 = vmatprep.subr.bf16.mxu0 %v3768_v12  ;;  %v3842_v12 = vld [vmem:[%s5171_s1 + $0x3ec] ss:$16 sps:$4 sm:$0xff]  }
  0x88   : > { %2041 = vmatmul.mubr.bf16.vlgmr.msra.gmra.mrb[8].mxu1 %v4315_v5  ;;  %v3783_v5 = vld [vmem:[%s5171_s1 + $0x24c] ss:$16 sps:$4 sm:$0xff]  }
  0x89   : > { %1935 = vmatmul.mubr.bf16.vlgmr.msra.gmra.mrb[0].mxu0 %v4533_v14  ;;  %2062 = vmatpush1.bf16.msra.mxu1 %v3769_v16  ;;  %v3840_v16 = vld [vmem:[%s5171_s1 + $0x3e8] ss:$16 sps:$4 sm:$0xff]  }
  0x8a   : > { %1956 = vmatpush1.bf16.msra.mxu0 %v3766_v15  ;;  %2063 = vmatprep.subr.bf16.mxu1 %v3777_v18  ;;  %v3932_v15 = vld [vmem:[%s5173_s3 + $0x54] ss:$8 sps:$4 sm:$0xff]   ;;  %v3930_v18 = vld [vmem:[%s5173_s3 + $0x50] ss:$8 sps:$4 sm:$0xff]  }
  0x8b   : > { %1957 = vmatprep.subr.bf16.mxu0 %v3774_v17  ;;  %1944 = vmatprep.mubr.bf16.mxu0 %v4548_v19  ;;  %v3845_v17 = vld [vmem:[%s5171_s1 + $0x40c] ss:$16 sps:$4 sm:$0xff]  }
  0x8c   : > { %2050 = vmatprep.mubr.bf16.mxu1 %v4389_v30  ;;  %v3792_v30 = vld [vmem:[%s5171_s1 + $0x684] ss:$16 sps:$4 sm:$0xff]  }
  0x8d   : > { %2064 = vmatpush1.bf16.msra.mxu1 %v3775_v21  ;;  %v3843_v21 = vld [vmem:[%s5171_s1 + $0x408] ss:$16 sps:$4 sm:$0xff]  }
  0x8e   : > { %1958 = vmatpush1.bf16.msra.mxu0 %v3772_v20  ;;  %2065 = vmatprep.subr.bf16.mxu1 %v3783_v5  ;;  %v3935_v20 = vld [vmem:[%s5173_s3 + $0x64] ss:$8 sps:$4 sm:$0xff]   ;;  %v3933_v5 = vld [vmem:[%s5173_s3 + $0x60] ss:$8 sps:$4 sm:$0xff]  }
  0x8f   : > { %1959 = vmatprep.subr.bf16.mxu0 %v3780_v22  ;;  %v3848_v22 = vld [vmem:[%s5171_s1 + $0x42c] ss:$16 sps:$4 sm:$0xff]  }
  0x90   : > { %2051 = vmatmul.mubr.bf16.gmra.mrb[12].mxu1 %v4392_v31  ;;  %v3795_v31 = vld [vmem:[%s5171_s1 + $0x28c] ss:$16 sps:$4 sm:$0xff]  }
  0x91   : > { %1945 = vmatmul.mubr.bf16.gmra.mrb[4].mxu0 %v4567_v23  ;;  %2066 = vmatpush1.bf16.msra.mxu1 %v3781_v25  ;;  %v3846_v25 = vld [vmem:[%s5171_s1 + $0x428] ss:$16 sps:$4 sm:$0xff]  }
  0x92   : > { %1960 = vmatpush1.bf16.msra.mxu0 %v3778_v24  ;;  %2067 = vmatprep.subr.bf16.mxu1 %v3789_v27  ;;  %v3938_v24 = vld [vmem:[%s5173_s3 + $0x74] ss:$8 sps:$4 sm:$0xff]  }
  0x93   : > { %1961 = vmatprep.subr.bf16.mxu0 %v3786_v26  ;;  %1987 = vmatprep.mubr.bf16.mxu0 %v4036_v33  ;;  %v4027_v26 = vld [vmem:[%s4241_s25 + $0x8] ss:$28 sps:$4 sm:$0xff]   ;;  %v3851_v27 = vld [vmem:[%s5171_s1 + $0x44c] ss:$16 sps:$4 sm:$0xff]   ;;  %s3101_s25 = sshll.u32 %s5181_s13, 3 }
  0x94   : > { %2093 = vmatprep.mubr.bf16.mxu1 %v4262_v52  ;;  %v3801_v52 = vld [vmem:[%s5171_s1 + $0x2ac] ss:$16 sps:$4 sm:$0xff]   ;;  %s339_s30 = scalar_lea.vmem %s5179_s9, %s3101_s25 }
  0x95   : > { %2068 = vmatpush1.bf16.msra.mxu1 %v3787_v29  ;;  %v3941_v29 = vld [vmem:[%s5173_s3 + $0x84] ss:$8 sps:$4 sm:$0xff]  }
  0x96   : > { %1962 = vmatpush1.bf16.msra.mxu0 %v3784_v28  ;;  %2069 = vmatprep.subr.bf16.mxu1 %v3795_v31  ;;  %v3936_v28 = vld [vmem:[%s5173_s3 + $0x70] ss:$8 sps:$4 sm:$0xff]   ;;  %v3939_v31 = vld [vmem:[%s5173_s3 + $0x80] ss:$8 sps:$4 sm:$0xff]  }
  0x97   : > { %1963 = vmatprep.subr.bf16.mxu0 %v3792_v30  ;;  %v3849_v30 = vld [vmem:[%s5171_s1 + $0x448] ss:$16 sps:$4 sm:$0xff]  }
  0x99   : > { %2070 = vmatpush1.bf16.msra.mxu1 %v3793_v35  ;;  %v3852_v35 = vld [vmem:[%s5171_s1 + $0x468] ss:$16 sps:$4 sm:$0xff]  }
  0x9a   : > { %1964 = vmatpush1.bf16.msra.mxu0 %v3790_v34  ;;  %2071 = vmatprep.subr.bf16.mxu1 %v3801_v52  ;;  %v3944_v34 = vld [vmem:[%s5173_s3 + $0x94] ss:$8 sps:$4 sm:$0xff]   ;;  %v3947_v52 = vld [vmem:[%s5173_s3 + $0xa4] ss:$8 sps:$4 sm:$0xff]  }
  0x9b   : > { %1965 = vmatprep.subr.bf16.mxu0 %v3798_v37  ;;  %v3857_v37 = vld [vmem:[%s5171_s1 + $0x48c] ss:$16 sps:$4 sm:$0xff]  }
  0x9d   : > { %2072 = vmatpush1.bf16.msra.mxu1 %v3799_v39  ;;  %v3945_v39 = vld [vmem:[%s5173_s3 + $0xa0] ss:$8 sps:$4 sm:$0xff]  }
  0x9e   : > { %1966 = vmatpush1.bf16.msra.mxu0 %v3796_v38  ;;  %2073 = vmatprep.subr.bf16.mxu1 %v3810_v42  ;;  %v3860_v38 = vld [vmem:[%s5171_s1 + $0x4ac] ss:$16 sps:$4 sm:$0xff]   ;;  %v3858_v42 = vld [vmem:[%s5171_s1 + $0x4a8] ss:$16 sps:$4 sm:$0xff]  }
  0x9f   : > { %1967 = vmatprep.subr.bf16.mxu0 %v3807_v40  ;;  %v3950_v40 = vld [vmem:[%s5173_s3 + $0xb4] ss:$8 sps:$4 sm:$0xff]  }
  0xa1   : > { %2074 = vmatpush1.bf16.msra.mxu1 %v3808_v44  ;;  %v3948_v44 = vld [vmem:[%s5173_s3 + $0xb0] ss:$8 sps:$4 sm:$0xff]  }
  0xa2   : > { %1968 = vmatpush1.bf16.msra.mxu0 %v3805_v43  ;;  %2075 = vmatprep.subr.bf16.mxu1 %v3816_v46  ;;  %v3863_v43 = vld [vmem:[%s5171_s1 + $0x4cc] ss:$16 sps:$4 sm:$0xff]   ;;  %v3861_v46 = vld [vmem:[%s5171_s1 + $0x4c8] ss:$16 sps:$4 sm:$0xff]  }
  0xa3   : > { %1969 = vmatprep.subr.bf16.mxu0 %v3813_v45  ;;  %v3953_v45 = vld [vmem:[%s5173_s3 + $0xc4] ss:$8 sps:$4 sm:$0xff]  }
  0xa5   : > { %2076 = vmatpush1.bf16.msra.mxu1 %v3814_v48  ;;  %v3951_v48 = vld [vmem:[%s5173_s3 + $0xc0] ss:$8 sps:$4 sm:$0xff]  }
  0xa6   : > { %1970 = vmatpush1.bf16.msra.mxu0 %v3811_v47  ;;  %2077 = vmatprep.subr.bf16.mxu1 %v3820_v49  ;;  %v3866_v47 = vld [vmem:[%s5171_s1 + $0x4ec] ss:$16 sps:$4 sm:$0xff]   ;;  %v3864_v49 = vld [vmem:[%s5171_s1 + $0x4e8] ss:$16 sps:$4 sm:$0xff]  }
  0xa7   : > { %2672 = vmatprep.subr.bf16.mxu0 %v3917_v60  ;;  %v3876_v60 = vld [vmem:[%s5171_s1 + $0x568] ss:$16 sps:$4 sm:$0xff]  }
  0xa9   : > { %1988 = vmatmul.mubr.bf16.vlgmr.msra.gmra.mrb[0].mxu0 %v4643_v50  ;;  %2078 = vmatpush1.bf16.msra.mxu1 %v3818_v51  ;;  %v3869_v51 = vld [vmem:[%s5171_s1 + $0x50c] ss:$16 sps:$4 sm:$0xff]  }
  0xaa   : > { %1997 = vmatprep.mubr.bf16.mxu0 %v4036_v33  ;;  %2079 = vmatprep.subr.bf16.mxu1 %v3823_v53  ;;  %v3867_v53 = vld [vmem:[%s5171_s1 + $0x508] ss:$16 sps:$4 sm:$0xff]  }
  0xab   : > { %2673 = vmatpush1.bf16.msra.mxu0 %v3915_v59  ;;  %v3878_v59 = vld [vmem:[%s5171_s1 + $0x56c] ss:$16 sps:$4 sm:$0xff]  }
  0xac   : > { %2674 = vmatprep.subr.bf16.mxu0 %v3920_v62  ;;  %v3879_v62 = vld [vmem:[%s5171_s1 + $0x588] ss:$16 sps:$4 sm:$0xff]  }
  0xad   : > { %2080 = vmatpush1.bf16.msra.mxu1 %v3821_v54  ;;  %v3872_v54 = vld [vmem:[%s5171_s1 + $0x52c] ss:$16 sps:$4 sm:$0xff]  }
  0xae   : > { %2081 = vmatprep.subr.bf16.mxu1 %v3827_v55  ;;  %v3870_v55 = vld [vmem:[%s5171_s1 + $0x528] ss:$16 sps:$4 sm:$0xff]  }
  0xaf   : > { %2675 = vmatpush1.bf16.msra.mxu0 %v3918_v0  ;;  %v3882_v0 = vld [vmem:[%s5171_s1 + $0x5a8] ss:$16 sps:$4 sm:$0xff]  }
  0xb0   : > { %2676 = vmatprep.subr.bf16.mxu0 %v3923_v1  ;;  %v3956_v1 = vld [vmem:[%s5173_s3 + $0xd4] ss:$8 sps:$4 sm:$0xff]  }
  0xb1   : > { %1998 = vmatmul.mubr.bf16.gmra.mrb[4].mxu0 %v4660_v56  ;;  %2082 = vmatpush1.bf16.msra.mxu1 %v3825_v57  ;;  %v3875_v57 = vld [vmem:[%s5171_s1 + $0x54c] ss:$16 sps:$4 sm:$0xff]  }
  0xb2   : > { %2083 = vmatprep.subr.bf16.mxu1 %v3830_v58  ;;  %v3873_v58 = vld [vmem:[%s5171_s1 + $0x548] ss:$16 sps:$4 sm:$0xff]  }
  0xb3   : > { %2677 = vmatpush1.bf16.msra.mxu0 %v3921_v4  ;;  %v3885_v4 = vld [vmem:[%s5171_s1 + $0x5c8] ss:$16 sps:$4 sm:$0xff]  }
  0xb4   : > { %2678 = vmatprep.subr.bf16.mxu0 %v3926_v8  ;;  %v3957_v8 = vld [vmem:[%s5173_s3 + $0xe0] ss:$8 sps:$4 sm:$0xff]  }
  0xb5   : > { %2084 = vmatpush1.bf16.msra.mxu1 %v3828_v61  ;;  %v3881_v61 = vld [vmem:[%s5171_s1 + $0x58c] ss:$16 sps:$4 sm:$0xff]  }
  0xb6   : > { %2085 = vmatprep.subr.bf16.mxu1 %v3833_v63  ;;  %v3884_v63 = vld [vmem:[%s5171_s1 + $0x5ac] ss:$16 sps:$4 sm:$0xff]  }
  0xb7   : > { %2679 = vmatpush1.bf16.msra.mxu0 %v3924_v9  ;;  %v3888_v9 = vld [vmem:[%s5171_s1 + $0x5e8] ss:$16 sps:$4 sm:$0xff]  }
  0xb8   : > { %2680 = vmatprep.subr.bf16.mxu0 %v3929_v10  ;;  %v3962_v10 = vld [vmem:[%s5173_s3 + $0xf4] ss:$8 sps:$4 sm:$0xff]  }
  0xb9   : > { %2086 = vmatpush1.bf16.msra.mxu1 %v3831_v2  ;;  %v3887_v2 = vld [vmem:[%s5171_s1 + $0x5cc] ss:$16 sps:$4 sm:$0xff]  }
  0xba   : > { %2087 = vmatprep.subr.bf16.mxu1 %v3836_v3  ;;  %v3954_v3 = vld [vmem:[%s5173_s3 + $0xd0] ss:$8 sps:$4 sm:$0xff]  }
  0xbb   : > { %2681 = vmatpush1.bf16.msra.mxu0 %v3927_v13  ;;  %v3891_v13 = vld [vmem:[%s5171_s1 + $0x608] ss:$16 sps:$4 sm:$0xff]  }
  0xbc   : > { %2682 = vmatprep.subr.bf16.mxu0 %v3932_v15  ;;  %v3896_v15 = vld [vmem:[%s5171_s1 + $0x62c] ss:$16 sps:$4 sm:$0xff]  }
  0xbd   : > { %2088 = vmatpush1.bf16.msra.mxu1 %v3834_v6  ;;  %v3959_v6 = vld [vmem:[%s5173_s3 + $0xe4] ss:$8 sps:$4 sm:$0xff]  }
  0xbe   : > { %2089 = vmatprep.subr.bf16.mxu1 %v3839_v7  ;;  %v3890_v7 = vld [vmem:[%s5171_s1 + $0x5ec] ss:$16 sps:$4 sm:$0xff]  }
  0xbf   : > { %2683 = vmatpush1.bf16.msra.mxu0 %v3930_v18  ;;  %v3897_v18 = vld [vmem:[%s5171_s1 + $0x648] ss:$16 sps:$4 sm:$0xff]  }
  0xc0   : > { %2684 = vmatprep.subr.bf16.mxu0 %v3935_v20  ;;  %v3965_v20 = vld [vmem:[%s5173_s3 + $0x104] ss:$8 sps:$4 sm:$0xff]  }
  0xc1   : > { %2090 = vmatpush1.bf16.msra.mxu1 %v3837_v11  ;;  %v3893_v11 = vld [vmem:[%s5171_s1 + $0x60c] ss:$16 sps:$4 sm:$0xff]  }
  0xc2   : > { %2091 = vmatprep.subr.bf16.mxu1 %v3842_v12  ;;  %v3960_v12 = vld [vmem:[%s5173_s3 + $0xf0] ss:$8 sps:$4 sm:$0xff]  }
  0xc3   : > { %2685 = vmatpush1.bf16.msra.mxu0 %v3933_v5  ;;  %v3906_v5 = vld [vmem:[%s5171_s1 + $0x6a8] ss:$16 sps:$4 sm:$0xff]  }
  0xc4   : > { %2686 = vmatprep.subr.bf16.mxu0 %v3938_v24  ;;  %v3911_v24 = vld [vmem:[%s5171_s1 + $0x6cc] ss:$16 sps:$4 sm:$0xff]  }
  0xc5   : > { %2092 = vmatpush1.bf16.msra.mxu1 %v3840_v16  ;;  %v3894_v16 = vld [vmem:[%s5171_s1 + $0x628] ss:$16 sps:$4 sm:$0xff]  }
  0xc6   : > { %2114 = vmatprep.subr.bf16.mxu1 %v3845_v17  ;;  %v3899_v17 = vld [vmem:[%s5171_s1 + $0x64c] ss:$16 sps:$4 sm:$0xff]  }
  0xc7   : > { %2687 = vmatpush1.bf16.msra.mxu0 %v3936_v28  ;;  %v3909_v28 = vld [vmem:[%s5171_s1 + $0x6c8] ss:$16 sps:$4 sm:$0xff]  }
  0xc8   : > { %2094 = vmatmul.mubr.bf16.vlgmr.msra.gmra.mrb[8].mxu1 %v4027_v26  ;;  %2688 = vmatprep.subr.bf16.mxu0 %v3941_v29 }
  0xc9   : > { %2115 = vmatpush1.bf16.msra.mxu1 %v3843_v21  ;;  %2103 = vmatprep.mubr.bf16.mxu1 %v4395_v32  ;;  %v3854_v32 = vld [vmem:[%s5171_s1 + $0x46c] ss:$16 sps:$4 sm:$0xff]  }
  0xca   : > { %2116 = vmatprep.subr.bf16.mxu1 %v3848_v22  ;;  %v3905_v21 = vld [vmem:[%s5171_s1 + $0x68c] ss:$16 sps:$4 sm:$0xff]   ;;  %v3903_v22 = vld [vmem:[%s5171_s1 + $0x688] ss:$16 sps:$4 sm:$0xff]  }
  0xcb   : > { %2689 = vmatpush1.bf16.msra.mxu0 %v3939_v31 }
  0xcc   : > { %2690 = vmatprep.subr.bf16.mxu0 %v3944_v34 }
  0xcd   : > { %2117 = vmatpush1.bf16.msra.mxu1 %v3846_v25 }
  0xce   : > { %2118 = vmatprep.subr.bf16.mxu1 %v3851_v27 }
  0xd0   : > { %2104 = vmatmul.mubr.bf16.gmra.mrb[12].mxu1 %v4410_v36  ;;  %v3942_v36 = vld [vmem:[%s5173_s3 + $0x90] ss:$8 sps:$4 sm:$0xff]  }
  0xd1   : > { %2119 = vmatpush1.bf16.msra.mxu1 %v3849_v30  ;;  %2146 = vmatprep.mubr.bf16.mxu1 %v4427_v41  ;;  %v3855_v41 = vld [vmem:[%s5171_s1 + $0x488] ss:$16 sps:$4 sm:$0xff]   ;;  %v3914_v30 = vld [vmem:[%s5171_s1 + $0x6ec] ss:$16 sps:$4 sm:$0xff]  }
  0xd2   : > { %2120 = vmatprep.subr.bf16.mxu1 %v3854_v32  ;;  %2691 = vmatpush1.bf16.msra.mxu0 %v3942_v36  ;;  %v3912_v32 = vld [vmem:[%s5171_s1 + $0x6e8] ss:$16 sps:$4 sm:$0xff]   ;;  %v584_v36 = vlaneseq }
  0xd3   : > { %2692 = vmatprep.subr.bf16.mxu0 %v3947_v52 }
  0xd4   : > { %v4950_v52 = vshrl.u32 %v584_v36, 7  ;;  %v3980_v36 = vld [vmem:[%s5173_s3 + $0x154] ss:$8 sps:$4 sm:$0xff]  }
  0xd5   : > { %2121 = vmatpush1.bf16.msra.mxu1 %v3852_v35 }
  0xd6   : > { %2122 = vmatprep.subr.bf16.mxu1 %v3857_v37  ;;  %2693 = vmatpush1.bf16.msra.mxu0 %v3945_v39 }
  0xd7   : > { %2694 = vmatprep.subr.bf16.mxu0 %v3950_v40 }
  0xd9   : > { %2123 = vmatpush1.bf16.msra.mxu1 %v3855_v41  ;;  %v586_v41 = vsub.s32 0, %v4950_v52 }
  0xda   : > { %2124 = vmatprep.subr.bf16.mxu1 %v3860_v38  ;;  %2695 = vmatpush1.bf16.msra.mxu0 %v3948_v44  ;;  %v4956_v38 = vld [vmem:[%s5172_s2] sm:$0xf] }
  0xdb   : > { %2696 = vmatprep.subr.bf16.mxu0 %v3953_v45 }
  0xdd   : > { %2125 = vmatpush1.bf16.msra.mxu1 %v3858_v42 }
  0xde   : > { %2126 = vmatprep.subr.bf16.mxu1 %v3863_v43  ;;  %2697 = vmatpush1.bf16.msra.mxu0 %v3951_v48 }
  0xdf   : > { %2698 = vmatprep.subr.bf16.mxu0 %v3956_v1 }
  0xe1   : > { %2127 = vmatpush1.bf16.msra.mxu1 %v3861_v46 }
  0xe2   : > { %2128 = vmatprep.subr.bf16.mxu1 %v3866_v47  ;;  %2699 = vmatpush1.bf16.msra.mxu0 %v3954_v3 }
  0xe3   : > { %2700 = vmatprep.subr.bf16.mxu0 %v3959_v6 }
  0xe5   : > { %2129 = vmatpush1.bf16.msra.mxu1 %v3864_v49 }
  0xe6   : > { %2130 = vmatprep.subr.bf16.mxu1 %v3869_v51  ;;  %2701 = vmatpush1.bf16.msra.mxu0 %v3957_v8  ;;  %v3963_v8 = vld [vmem:[%s5173_s3 + $0x100] ss:$8 sps:$4 sm:$0xff]  }
  0xe7   : > { %2702 = vmatprep.subr.bf16.mxu0 %v3962_v10 }
  0xe9   : > { %2131 = vmatpush1.bf16.msra.mxu1 %v3867_v53 }
  0xea   : > { %2132 = vmatprep.subr.bf16.mxu1 %v3872_v54  ;;  %2703 = vmatpush1.bf16.msra.mxu0 %v3960_v12  ;;  %v3968_v12 = vld [vmem:[%s5173_s3 + $0x114] ss:$8 sps:$4 sm:$0xff]  }
  0xeb   : > { %2725 = vmatprep.subr.bf16.mxu0 %v3965_v20  ;;  %v3966_v20 = vld [vmem:[%s5173_s3 + $0x110] ss:$8 sps:$4 sm:$0xff]  }
  0xed   : > { %2133 = vmatpush1.bf16.msra.mxu1 %v3870_v55 }
  0xee   : > { %2134 = vmatprep.subr.bf16.mxu1 %v3875_v57 }
  0xf1   : > { %2135 = vmatpush1.bf16.msra.mxu1 %v3873_v58 }
  0xf2   : > { %2136 = vmatprep.subr.bf16.mxu1 %v3878_v59 }
  0xf5   : > { %2137 = vmatpush1.bf16.msra.mxu1 %v3876_v60 }
  0xf6   : > { %2138 = vmatprep.subr.bf16.mxu1 %v3881_v61 }
  0xf9   : > { %2139 = vmatpush1.bf16.msra.mxu1 %v3879_v62 }
  0xfa   : > { %2140 = vmatprep.subr.bf16.mxu1 %v3884_v63 }
  0xfd   : > { %2141 = vmatpush1.bf16.msra.mxu1 %v3882_v0 }
  0xfe   : > { %2142 = vmatprep.subr.bf16.mxu1 %v3887_v2 }
 0x101   : > { %2143 = vmatpush1.bf16.msra.mxu1 %v3885_v4 }
 0x102   : > { %2144 = vmatprep.subr.bf16.mxu1 %v3890_v7 }
 0x105   : > { %2145 = vmatpush1.bf16.msra.mxu1 %v3888_v9 }
 0x106   : > { %2167 = vmatprep.subr.bf16.mxu1 %v3893_v11 }
 0x108   : > { %2147 = vmatmul.mubr.bf16.vlgmr.msra.gmra.mrb[8].mxu1 %v4533_v14  ;;  %v3902_v14 = vld [vmem:[%s5171_s1 + $0x66c] ss:$16 sps:$4 sm:$0xff]  }
 0x109   : > { %2168 = vmatpush1.bf16.msra.mxu1 %v3891_v13  ;;  %2156 = vmatprep.mubr.bf16.mxu1 %v4548_v19  ;;  %v3900_v19 = vld [vmem:[%s5171_s1 + $0x668] ss:$16 sps:$4 sm:$0xff]  }
 0x10a   : > { %2169 = vmatprep.subr.bf16.mxu1 %v3896_v15 }
 0x10d   : > { %2170 = vmatpush1.bf16.msra.mxu1 %v3894_v16 }
 0x10e   : > { %2171 = vmatprep.subr.bf16.mxu1 %v3899_v17 }
 0x110   : > { %2157 = vmatmul.mubr.bf16.gmra.mrb[12].mxu1 %v4567_v23  ;;  %v3908_v23 = vld [vmem:[%s5171_s1 + $0x6ac] ss:$16 sps:$4 sm:$0xff]  }
 0x111   : > { %2172 = vmatpush1.bf16.msra.mxu1 %v3897_v18  ;;  %2199 = vmatprep.mubr.bf16.mxu1 %v4036_v33 }
 0x112   : > { %2173 = vmatprep.subr.bf16.mxu1 %v3902_v14 }
 0x115   : > { %2174 = vmatpush1.bf16.msra.mxu1 %v3900_v19 }
 0x116   : > { %2175 = vmatprep.subr.bf16.mxu1 %v3905_v21  ;;  %v3971_v21 = vld [vmem:[%s5173_s3 + $0x124] ss:$8 sps:$4 sm:$0xff]  }
 0x119   : > { %2176 = vmatpush1.bf16.msra.mxu1 %v3903_v22 }
 0x11a   : > { %2177 = vmatprep.subr.bf16.mxu1 %v3908_v23 }
 0x11b   : > { %v1830_v25 = vpop.f32.mrb[0].mxu1 }
 0x11c   : > { %v1832_v26 = vpop.f32.mrb[1].mxu1 }
 0x11d   : > { %v1834_v27 = vpop.f32.mrb[2].mxu1  ;;  %2178 = vmatpush1.bf16.msra.mxu1 %v3906_v5 }
 0x11e   : > { %v1836_v29 = vpop.f32.mrb[3].mxu1  ;;  %2179 = vmatprep.subr.bf16.mxu1 %v3911_v24 }
 0x121   : > { %2180 = vmatpush1.bf16.msra.mxu1 %v3909_v28  ;;  %v3974_v28 = vld [vmem:[%s5173_s3 + $0x134] ss:$8 sps:$4 sm:$0xff]  }
 0x122   : > { %2181 = vmatprep.subr.bf16.mxu1 %v3914_v30  ;;  %v3972_v30 = vld [vmem:[%s5173_s3 + $0x130] ss:$8 sps:$4 sm:$0xff]  }
 0x123   : > { %v1840_v31 = vpop.f32.mrb[4].mxu1 }
 0x124   : > { %v1842_v34 = vpop.f32.mrb[5].mxu1 }
 0x125   : > { %2182 = vmatpush1.bf16.msra.mxu1 %v3912_v32  ;;  %v1844_v35 = vpop.f32.mrb[6].mxu1  ;;  %v4994_v32 = vld [vmem:[%s5175_s5] sm:$0xff]  }
 0x126   : > { %v1846_v37 = vpop.f32.mrb[7].mxu1 }
 0x128   : > { %2200 = vmatmul.mubr.bf16.vlgmr.msra.gmra.mrb[8].mxu1 %v4643_v50  ;;  %v590_v50 = vsub.s32 1, %v4950_v52 }
 0x129   : > { %2209 = vmatprep.mubr.bf16.mxu1 %v4036_v33  ;;  %v587_v33 = vrot.slane %v4956_v38, %v586_v41 }
 0x12b   : > { %v1831_v39 = vadd.f32 %v1830_v25, %v587_v33  ;;  %v1835_v43 = vadd.f32 %v1834_v27, %v587_v33  ;;  %v1841_v59 = vadd.f32 %v1840_v31, %v587_v33  ;;  %v1845_v3 = vadd.f32 %v1844_v35, %v587_v33  ;;  %v3969_v27 = vld [vmem:[%s5173_s3 + $0x120] ss:$8 sps:$4 sm:$0xff]   ;;  %v3977_v31 = vld [vmem:[%s5173_s3 + $0x144] ss:$8 sps:$4 sm:$0xff]   ;;  %v5021_v33 = vld [vmem:[%s5175_s5 + $0x50] sm:$0xff]  }
 0x12c   : > { %v3975_v35 = vld [vmem:[%s5173_s3 + $0x140] ss:$8 sps:$4 sm:$0xff]  }
 0x130   : > { %2210 = vmatmul.mubr.bf16.gmra.mrb[12].mxu1 %v4660_v56  ;;  %v591_v56 = vrot.slane %v4956_v38, %v590_v50 }
 0x132   : > { %v1833_v40 = vadd.f32 %v1832_v26, %v591_v56  ;;  %v1837_v46 = vadd.f32 %v1836_v29, %v591_v56  ;;  %v1843_v62 = vadd.f32 %v1842_v34, %v591_v56  ;;  %v1847_v9 = vadd.f32 %v1846_v37, %v591_v56  ;;  %v4986_v29 = vld [vmem:[%s5175_s5 + $0x40] sm:$0xff]   ;;  %v5002_v34 = vld [vmem:[%s5175_s5 + $0x48] sm:$0xff]   ;;  %v3978_v56 = vld [vmem:[%s5173_s3 + $0x150] ss:$8 sps:$4 sm:$0xff]  }
 0x133   : > { %3453 = vmatprep.subr.bf16.mxu1 %v4986_v29  ;;  %v5013_v37 = vld [vmem:[%s5175_s5 + $0x8] sm:$0xff]  }
 0x134   : > { %3461 = vmatpush3.bf16.msra.mxu1 %v4994_v32 }
 0x135   : > { %3454 = vmatprep.subr.bf16.mxu1 %v5002_v34 }
 0x138   : > { %3462 = vmatpush3.bf16.msra.mxu1 %v5013_v37 }
 0x139   : > { %3455 = vmatprep.subr.bf16.mxu1 %v5021_v33 }
 0x17c   : > { %v1989_v42 = vpop.f32.mrb[0].mxu0 }
 0x17d   : > { %v3470_v44 = vadd.f32 %v1989_v42, %v1831_v39  ;;  %v1991_v45 = vpop.f32.mrb[1].mxu0  ;;  %v5031_v39 = vld [vmem:[%s5175_s5 + $0x10] sm:$0xff]   ;;  %v5039_v42 = vld [vmem:[%s5175_s5 + $0x58] sm:$0xff]  }
 0x17e   : > { %v3472_v47 = vadd.f32 %v1991_v45, %v1833_v40  ;;  %v1993_v48 = vpop.f32.mrb[2].mxu0  ;;  %v3983_v40 = vld [vmem:[%s5173_s3 + $0x164] ss:$8 sps:$4 sm:$0xff]   ;;  %3463 = vmatpush3.bf16.msra.mxu1 %v5031_v39  ;;  %v3986_v45 = vld [vmem:[%s5173_s3 + $0x174] ss:$8 sps:$4 sm:$0xff]  }
 0x17f   : > { %v2236_v49 = vmul.f32 0.2, %v3470_v44  ;;  %v3474_v51 = vadd.f32 %v1993_v48, %v1835_v43  ;;  %v1995_v53 = vpop.f32.mrb[3].mxu0  ;;  %vm2220_vm0 = vcmp.gt.f32.partialorder %v3470_v44, 0.0  ;;  %3456 = vmatprep.subr.bf16.mxu1 %v5039_v42  ;;  %v3981_v43 = vld [vmem:[%s5173_s3 + $0x160] ss:$8 sps:$4 sm:$0xff]  }
 0x180   : > { %v2237_v54 = vmul.f32 0.2, %v3472_v47  ;;  %v3476_v55 = vadd.f32 %v1995_v53, %v1837_v46  ;;  %vm2221_vm1 = vcmp.gt.f32.partialorder %v3472_v47, 0.0  ;;  %v5057_v46 = vld [vmem:[%s5175_s5 + $0x60] sm:$0xff]   ;;  %v3992_v53 = vld [vmem:[%s5173_s3 + $0x194] ss:$8 sps:$4 sm:$0xff]  }
 0x181   : > { %vm2224_vm2 = vcmp.gt.f32.partialorder %v3474_v51, 0.0  ;;  %v2240_v57 = vmul.f32 0.2, %v3474_v51  ;;  %v2252_v60 = vsel %vm2220_vm0, %v3470_v44, %v2236_v49  ;;  %v5049_v44 = vld [vmem:[%s5175_s5 + $0x18] sm:$0xff]   ;;  %v5067_v48 = vld [vmem:[%s5175_s5 + $0x20] sm:$0xff]  }
 0x182   : > { %vm2225_vm3 = vcmp.gt.f32.partialorder %v3476_v55, 0.0  ;;  %v2241_v58 = vmul.f32 0.2, %v3476_v55  ;;  %v2253_v1 = vsel %vm2221_vm1, %v3472_v47, %v2237_v54  ;;  %3464 = vmatpush3.bf16.msra.mxu1 %v5049_v44  ;;  %v3984_v47 = vld [vmem:[%s5173_s3 + $0x170] ss:$8 sps:$4 sm:$0xff]  }
 0x183   : > { %v2256_v61 = vsel %vm2224_vm2, %v3474_v51, %v2240_v57  ;;  %3457 = vmatprep.subr.bf16.mxu1 %v5057_v46  ;;  %v3989_v49 = vld [vmem:[%s5173_s3 + $0x184] ss:$8 sps:$4 sm:$0xff]   ;;  %v3987_v51 = vld [vmem:[%s5173_s3 + $0x180] ss:$8 sps:$4 sm:$0xff]   ;;  %v3990_v54 = vld [vmem:[%s5173_s3 + $0x190] ss:$8 sps:$4 sm:$0xff]  }
 0x184   : > { %v2268_v63 = vpack.c.bf16 %v2256_v61, %v2252_v60  ;;  %v1999_v0 = vpop.f32.mrb[4].mxu0  ;;  %v2257_v2 = vsel %vm2225_vm3, %v3476_v55, %v2241_v58  ;;  %v3995_v55 = vld [vmem:[%s5173_s3 + $0x1a4] ss:$8 sps:$4 sm:$0xff]   ;;  %v3993_v57 = vld [vmem:[%s5173_s3 + $0x1a0] ss:$8 sps:$4 sm:$0xff]  }
 0x185   : > { %v3478_v4 = vadd.f32 %v1999_v0, %v1841_v59  ;;  %v2001_v6 = vpop.f32.mrb[5].mxu0  ;;  %v2269_v7 = vpack.c.bf16 %v2257_v2, %v2253_v1  ;;  %v3998_v58 = vld [vmem:[%s5173_s3 + $0x1b4] ss:$8 sps:$4 sm:$0xff]   ;;  %v3996_v59 = vld [vmem:[%s5173_s3 + $0x1b0] ss:$8 sps:$4 sm:$0xff]  }
 0x186   : > { %v3480_v10 = vadd.f32 %v2001_v6, %v1843_v62  ;;  %v2003_v11 = vpop.f32.mrb[6].mxu0  ;;  %3465 = vmatpush3.bf16.msra.mxu1 %v5067_v48  ;;  %v4001_v60 = vld [vmem:[%s5173_s3 + $0x1c4] ss:$8 sps:$4 sm:$0xff]   ;;  %v3999_v61 = vld [vmem:[%s5173_s3 + $0x1c0] ss:$8 sps:$4 sm:$0xff]   ;;  %v598_v6 = vsub.s32 3, %v4950_v52 }
 0x187   : > { %v2244_v13 = vmul.f32 0.2, %v3478_v4  ;;  %v3482_v15 = vadd.f32 %v2003_v11, %v1845_v3  ;;  %v2005_v16 = vpop.f32.mrb[7].mxu0  ;;  %2704 = vmatprep.mubr.bf16.mxu0 %v2269_v7  ;;  %vm2228_vm4 = vcmp.gt.f32.partialorder %v3478_v4, 0.0  ;;  %v4004_v62 = vld [vmem:[%s5173_s3 + $0x1d4] ss:$8 sps:$4 sm:$0xff]  }
 0x188   : > { %v2245_v17 = vmul.f32 0.2, %v3480_v10  ;;  %v3484_v18 = vadd.f32 %v2005_v16, %v1847_v9  ;;  %2705 = vmatmul.mubr.bf16.vlgmr.msra.gmra.mrb[8].mxu0 %v2268_v63  ;;  %vm2229_vm5 = vcmp.gt.f32.partialorder %v3480_v10, 0.0  ;;  %v4002_v63 = vld [vmem:[%s5173_s3 + $0x1d0] ss:$8 sps:$4 sm:$0xff]  }
 0x189   : > { %vm2232_vm6 = vcmp.gt.f32.partialorder %v3482_v15, 0.0  ;;  %v2248_v14 = vmul.f32 0.2, %v3482_v15  ;;  %2726 = vmatpush1.bf16.msra.mxu0 %v3963_v8  ;;  %v2260_v22 = vsel %vm2228_vm4, %v3478_v4, %v2244_v13  ;;  %v4007_v0 = vld [vmem:[%s5173_s3 + $0x1e4] ss:$8 sps:$4 sm:$0xff]   ;;  %v594_v4 = vsub.s32 2, %v4950_v52 }
 0x18a   : > { %vm2233_vm7 = vcmp.gt.f32.partialorder %v3484_v18, 0.0  ;;  %v2249_v19 = vmul.f32 0.2, %v3484_v18  ;;  %2727 = vmatprep.subr.bf16.mxu0 %v3968_v12  ;;  %v2261_v5 = vsel %vm2229_vm5, %v3480_v10, %v2245_v17  ;;  %v4005_v1 = vld [vmem:[%s5173_s3 + $0x1e0] ss:$8 sps:$4 sm:$0xff]   ;;  %v599_v8 = vrot.slane %v4956_v38, %v598_v6 }
 0x18b   : > { %v2264_v23 = vsel %vm2232_vm6, %v3482_v15, %v2248_v14  ;;  %v4010_v2 = vld [vmem:[%s5173_s3 + $0x1f4] ss:$8 sps:$4 sm:$0xff]   ;;  %v4008_v3 = vld [vmem:[%s5173_s3 + $0x1f0] ss:$8 sps:$4 sm:$0xff]   ;;  %v595_v7 = vrot.slane %v4956_v38, %v594_v4 }
 0x18c   : > { %v2265_v24 = vsel %vm2233_vm7, %v3484_v18, %v2249_v19  ;;  %v2272_v25 = vpack.c.bf16 %v2264_v23, %v2260_v22 }
 0x18d   : > { %v2273_v26 = vpack.c.bf16 %v2265_v24, %v2261_v5  ;;  %2728 = vmatpush1.bf16.msra.mxu0 %v3966_v20 }
 0x18e   : > { %2729 = vmatprep.subr.bf16.mxu0 %v3971_v21 }
 0x18f   : > { %2714 = vmatprep.mubr.bf16.mxu0 %v2273_v26 }
 0x190   : > { %2715 = vmatmul.mubr.bf16.gmra.mrb[12].mxu0 %v2272_v25 }
 0x191   : > { %2730 = vmatpush1.bf16.msra.mxu0 %v3969_v27 }
 0x192   : > { %2731 = vmatprep.subr.bf16.mxu0 %v3974_v28 }
 0x195   : > { %2732 = vmatpush1.bf16.msra.mxu0 %v3972_v30 }
 0x196   : > { %2733 = vmatprep.subr.bf16.mxu0 %v3977_v31 }
 0x199   : > { %2734 = vmatpush1.bf16.msra.mxu0 %v3975_v35 }
 0x19a   : > { %2735 = vmatprep.subr.bf16.mxu0 %v3980_v36 }
 0x19d   : > { %2736 = vmatpush1.bf16.msra.mxu0 %v3978_v56 }
 0x19e   : > { %2737 = vmatprep.subr.bf16.mxu0 %v3983_v40 }
 0x1a1   : > { %2738 = vmatpush1.bf16.msra.mxu0 %v3981_v43 }
 0x1a2   : > { %2739 = vmatprep.subr.bf16.mxu0 %v3986_v45 }
 0x1a5   : > { %2740 = vmatpush1.bf16.msra.mxu0 %v3984_v47 }
 0x1a6   : > { %2741 = vmatprep.subr.bf16.mxu0 %v3989_v49 }
 0x1a9   : > { %2742 = vmatpush1.bf16.msra.mxu0 %v3987_v51 }
 0x1aa   : > { %2743 = vmatprep.subr.bf16.mxu0 %v3992_v53 }
 0x1ad   : > { %2744 = vmatpush1.bf16.msra.mxu0 %v3990_v54 }
 0x1ae   : > { %2745 = vmatprep.subr.bf16.mxu0 %v3995_v55 }
 0x1b1   : > { %2746 = vmatpush1.bf16.msra.mxu0 %v3993_v57 }
 0x1b2   : > { %2747 = vmatprep.subr.bf16.mxu0 %v3998_v58 }
 0x1b5   : > { %2748 = vmatpush1.bf16.msra.mxu0 %v3996_v59 }
 0x1b6   : > { %2749 = vmatprep.subr.bf16.mxu0 %v4001_v60 }
 0x1b9   : > { %2750 = vmatpush1.bf16.msra.mxu0 %v3999_v61 }
 0x1ba   : > { %2751 = vmatprep.subr.bf16.mxu0 %v4004_v62 }
 0x1bd   : > { %2752 = vmatpush1.bf16.msra.mxu0 %v4002_v63 }
 0x1be   : > { %2753 = vmatprep.subr.bf16.mxu0 %v4007_v0 }
 0x1c1   : > { %2754 = vmatpush1.bf16.msra.mxu0 %v4005_v1 }
 0x1c2   : > { %2755 = vmatprep.subr.bf16.mxu0 %v4010_v2 }
 0x1c5   : > { %2756 = vmatpush1.bf16.msra.mxu0 %v4008_v3 }
 0x1c6   : > { %3425 = vmatprep.subr.bf16.mxu0 %v4986_v29 }
 0x1fb   : > { %v2201_v9 = vpop.f32.mrb[8].mxu1 }
 0x1fc   : > { %v3485_v10 = vadd.f32 %v2201_v9, %v595_v7  ;;  %v2203_v11 = vpop.f32.mrb[9].mxu1 }
 0x1fd   : > { %v3486_v12 = vadd.f32 %v2203_v11, %v599_v8  ;;  %v2205_v13 = vpop.f32.mrb[10].mxu1 }
 0x1fe   : > { %v2238_v15 = vmul.f32 0.2, %v3485_v10  ;;  %v3487_v16 = vadd.f32 %v2205_v13, %v595_v7  ;;  %v2207_v17 = vpop.f32.mrb[11].mxu1  ;;  %vm2222_vm8 = vcmp.gt.f32.partialorder %v3485_v10, 0.0 }
 0x1ff   : > { %v2239_v18 = vmul.f32 0.2, %v3486_v12  ;;  %v3488_v14 = vadd.f32 %v2207_v17, %v599_v8  ;;  %vm2223_vm9 = vcmp.gt.f32.partialorder %v3486_v12, 0.0 }
 0x200   : > { %vm2226_vm10 = vcmp.gt.f32.partialorder %v3487_v16, 0.0  ;;  %v2242_v20 = vmul.f32 0.2, %v3487_v16  ;;  %v2254_v21 = vsel %vm2222_vm8, %v3485_v10, %v2238_v15 }
 0x201   : > { %vm2227_vm11 = vcmp.gt.f32.partialorder %v3488_v14, 0.0  ;;  %v2243_v19 = vmul.f32 0.2, %v3488_v14  ;;  %v2255_v5 = vsel %vm2223_vm9, %v3486_v12, %v2239_v18 }
 0x202   : > { %v2258_v22 = vsel %vm2226_vm10, %v3487_v16, %v2242_v20 }
 0x203   : > { %v2270_v23 = vpack.c.bf16 %v2258_v22, %v2254_v21  ;;  %v2211_v38 = vpop.f32.mrb[12].mxu1  ;;  %v2259_v24 = vsel %vm2227_vm11, %v3488_v14, %v2243_v19 }
 0x204   : > { %v3489_v25 = vadd.f32 %v2211_v38, %v595_v7  ;;  %v2213_v26 = vpop.f32.mrb[13].mxu1  ;;  %v2271_v27 = vpack.c.bf16 %v2259_v24, %v2255_v5 }
 0x205   : > { %v3490_v28 = vadd.f32 %v2213_v26, %v599_v8  ;;  %v2215_v29 = vpop.f32.mrb[14].mxu1 }
 0x206   : > { %v2246_v30 = vmul.f32 0.2, %v3489_v25  ;;  %v3491_v31 = vadd.f32 %v2215_v29, %v595_v7  ;;  %v2217_v35 = vpop.f32.mrb[15].mxu1  ;;  %2757 = vmatprep.mubr.bf16.mxu0 %v2271_v27  ;;  %vm2230_vm12 = vcmp.gt.f32.partialorder %v3489_v25, 0.0 }
 0x207   : > { %v2247_v36 = vmul.f32 0.2, %v3490_v28  ;;  %v3492_v56 = vadd.f32 %v2217_v35, %v599_v8  ;;  %2758 = vmatmul.mubr.bf16.vlgmr.msra.gmra.mrb[8].mxu0 %v2270_v23  ;;  %vm2231_vm13 = vcmp.gt.f32.partialorder %v3490_v28, 0.0 }
 0x208   : > { %vm2234_vm14 = vcmp.gt.f32.partialorder %v3491_v31, 0.0  ;;  %v2250_v40 = vmul.f32 0.2, %v3491_v31  ;;  %3426 = vmatpush3.bf16.msra.mxu0 %v4994_v32  ;;  %v2262_v45 = vsel %vm2230_vm12, %v3489_v25, %v2246_v30  ;;  %v4021_v32 = vld [vmem:[%s5175_s5 + $0x68] sm:$0xff]   ;;  %v3404_v25 = vld [vmem:[%s5176_s6] ss:$0 sm:$0xff] }
 0x209   : > { %vm2235_vm15 = vcmp.gt.f32.partialorder %v3492_v56, 0.0  ;;  %v2251_v43 = vmul.f32 0.2, %v3492_v56  ;;  %3427 = vmatprep.subr.bf16.mxu0 %v5002_v34  ;;  %v2263_v49 = vsel %vm2231_vm13, %v3490_v28, %v2247_v36  ;;  %v4022_v34 = vld [vmem:[%s5175_s5 + $0x28] sm:$0xff]   ;;  %3458 = vmatprep.subr.bf16.mxu1 %v4021_v32  ;;  %vm3032_vm12 = vcmask 7168  }
 0x20a   : > { %v2266_v47 = vsel %vm2234_vm14, %v3491_v31, %v2250_v40  ;;  %3466 = vmatpush3.bf16.msra.mxu1 %v4022_v34 }
 0x20b   : > { %v2267_v51 = vsel %vm2235_vm15, %v3492_v56, %v2251_v43  ;;  %v2274_v53 = vpack.c.bf16 %v2266_v47, %v2262_v45  ;;  %v3421_v56 = vld [vmem:[%s5177_s7] ss:$0 sm:$0xff] }
 0x20c   : > { %v2275_v54 = vpack.c.bf16 %v2267_v51, %v2263_v49  ;;  %3428 = vmatpush3.bf16.msra.mxu0 %v5013_v37  ;;  %v4023_v37 = vld [vmem:[%s5175_s5 + $0x70] sm:$0xff]  }
 0x20d   : > { %3429 = vmatprep.subr.bf16.mxu0 %v5021_v33  ;;  %v4024_v33 = vld [vmem:[%s5175_s5 + $0x30] sm:$0xff]   ;;  %3459 = vmatprep.subr.bf16.mxu1 %v4023_v37 }
 0x20e   : > { %2767 = vmatprep.mubr.bf16.mxu0 %v2275_v54  ;;  %3467 = vmatpush3.bf16.msra.mxu1 %v4024_v33 }
 0x20f   : > { %2768 = vmatmul.mubr.bf16.gmra.mrb[12].mxu0 %v2274_v53 }
 0x210   : > { %3430 = vmatpush3.bf16.msra.mxu0 %v5031_v39  ;;  %v4025_v39 = vld [vmem:[%s5175_s5 + $0x78] sm:$0xff]  }
 0x211   : > { %3431 = vmatprep.subr.bf16.mxu0 %v5039_v42  ;;  %v4026_v42 = vld [vmem:[%s5175_s5 + $0x38] sm:$0xff]   ;;  %3460 = vmatprep.subr.bf16.mxu1 %v4025_v39 }
 0x212   : > { %3468 = vmatpush3.bf16.msra.mxu1 %v4026_v42 }
 0x214   : > { %3432 = vmatpush3.bf16.msra.mxu0 %v5049_v44  ;;  %v2340_v44 = vld [vmem:[%s5174_s4] sm:$0x3] }
 0x215   : > { %3433 = vmatprep.subr.bf16.mxu0 %v5057_v46  ;;  %v2345_v46 = vrot.slane %v2340_v44, %v586_v41 }
 0x218   : > { %3434 = vmatpush3.bf16.msra.mxu0 %v5067_v48  ;;  %v2349_v48 = vrot.slane %v2340_v44, %v590_v50 }
 0x219   : > { %3435 = vmatprep.subr.bf16.mxu0 %v4021_v32 }
 0x21c   : > { %3436 = vmatpush3.bf16.msra.mxu0 %v4022_v34 }
 0x21d   : > { %3437 = vmatprep.subr.bf16.mxu0 %v4023_v37 }
 0x220   : > { %3438 = vmatpush3.bf16.msra.mxu0 %v4024_v33 }
 0x221   : > { %3439 = vmatprep.subr.bf16.mxu0 %v4025_v39 }
 0x224   : > { %3440 = vmatpush3.bf16.msra.mxu0 %v4026_v42 }
 0x2da   : > { %v2759_v55 = vpop.f32.mrb[8].mxu0 }
 0x2db   : > { %v3493_v57 = vadd.f32 %v2759_v55, %v2345_v46  ;;  %v2761_v58 = vpop.f32.mrb[9].mxu0 }
 0x2dc   : > { %v3494_v59 = vadd.f32 %v2761_v58, %v2349_v48  ;;  %v2763_v60 = vpop.f32.mrb[10].mxu0  ;;  %v3422_v58 = vld [vmem:[#allocation2] ss:$0 sm:$0xff] }
 0x2dd   : > { %v2786_v61 = vmul.f32 0.2, %v3493_v57  ;;  %v3495_v62 = vadd.f32 %v2763_v60, %v2345_v46  ;;  %v2765_v63 = vpop.f32.mrb[11].mxu0  ;;  %vm2778_vm0 = vcmp.gt.f32.partialorder %v3493_v57, 0.0 }
 0x2de   : > { %v2787_v0 = vmul.f32 0.2, %v3494_v59  ;;  %v3496_v1 = vadd.f32 %v2765_v63, %v2349_v48  ;;  %vm2779_vm1 = vcmp.gt.f32.partialorder %v3494_v59, 0.0 }
 0x2df   : > { %vm2780_vm2 = vcmp.gt.f32.partialorder %v3495_v62, 0.0  ;;  %v2788_v2 = vmul.f32 0.2, %v3495_v62  ;;  %v2794_v41 = vsel %vm2778_vm0, %v3493_v57, %v2786_v61 }
 0x2e0   : > { %vm2781_vm3 = vcmp.gt.f32.partialorder %v3496_v1, 0.0  ;;  %v2789_v3 = vmul.f32 0.2, %v3496_v1  ;;  %v2795_v6 = vsel %vm2779_vm1, %v3494_v59, %v2787_v0 }
 0x2e1   : > { %v2796_v4 = vsel %vm2780_vm2, %v3495_v62, %v2788_v2 }
 0x2e2   : > { %v2802_v52 = vpack.c.bf16 %v2796_v4, %v2794_v41  ;;  %v2769_v50 = vpop.f32.mrb[12].mxu0  ;;  %v2797_v7 = vsel %vm2781_vm3, %v3496_v1, %v2789_v3 }
 0x2e3   : > { %v3497_v8 = vadd.f32 %v2769_v50, %v2345_v46  ;;  %v2771_v9 = vpop.f32.mrb[13].mxu0  ;;  %v2803_v10 = vpack.c.bf16 %v2797_v7, %v2795_v6 }
 0x2e4   : > { %v3498_v11 = vadd.f32 %v2771_v9, %v2349_v48  ;;  %v2773_v12 = vpop.f32.mrb[14].mxu0 }
 0x2e5   : > { %v2790_v13 = vmul.f32 0.2, %v3497_v8  ;;  %v3499_v15 = vadd.f32 %v2773_v12, %v2345_v46  ;;  %v2775_v16 = vpop.f32.mrb[15].mxu0  ;;  %2973 = vmatprep.mubr.bf16.mxu0 %v2803_v10  ;;  %vm2782_vm4 = vcmp.gt.f32.partialorder %v3497_v8, 0.0 }
 0x2e6   : > { %v2791_v17 = vmul.f32 0.2, %v3498_v11  ;;  %v3500_v18 = vadd.f32 %v2775_v16, %v2349_v48  ;;  %2974 = vmatmul.mubr.bf16.vlgmr.msra.gmra.mrb[16].mxu0 %v2802_v52  ;;  %vm2783_vm5 = vcmp.gt.f32.partialorder %v3498_v11, 0.0 }
 0x2e7   : > { %vm2784_vm6 = vcmp.gt.f32.partialorder %v3499_v15, 0.0  ;;  %v2792_v14 = vmul.f32 0.2, %v3499_v15  ;;  %v2798_v19 = vsel %vm2782_vm4, %v3497_v8, %v2790_v13 }
 0x2e8   : > { %vm2785_vm7 = vcmp.gt.f32.partialorder %v3500_v18, 0.0  ;;  %v2793_v20 = vmul.f32 0.2, %v3500_v18  ;;  %v2799_v23 = vsel %vm2783_vm5, %v3498_v11, %v2791_v17 }
 0x2e9   : > { %v2800_v21 = vsel %vm2784_vm6, %v3499_v15, %v2792_v14 }
 0x2ea   : > { %v2804_v22 = vpack.c.bf16 %v2800_v21, %v2798_v19  ;;  %v2801_v38 = vsel %vm2785_vm7, %v3500_v18, %v2793_v20 }
 0x2eb   : > { %v2805_v5 = vpack.c.bf16 %v2801_v38, %v2799_v23 }
 0x2ed   : > { %2981 = vmatprep.mubr.bf16.mxu1 %v2805_v5 }
 0x2ee   : > { %2982 = vmatmul.mubr.bf16.vlgmr.msra.gmra.mrb[16].mxu1 %v2804_v22 }
 0x3b9   : > { %v3441_v24 = vpop.f32.mrb[16].mxu0 }
 0x3ba   : > { %v3442_v26 = vpop.f32.mrb[17].mxu0 }
 0x3bb   : > { %v3443_v27 = vadd.f32 %v3442_v26, %v3441_v24  ;;  %v3444_v28 = vpop.f32.mrb[18].mxu0 }
 0x3bc   : > { %v3445_v29 = vpop.f32.mrb[19].mxu0 }
 0x3bd   : > { %v2976_v30 = vadd.f32 %v3443_v27, %v3404_v25  ;;  %v3446_v31 = vadd.f32 %v3445_v29, %v3444_v28 }
 0x3bf   : > { %v2979_v35 = vadd.f32 %v3446_v31, %v3404_v25  ;;  %vm2990_vm8 = vcmp.gt.f32.partialorder %v2976_v30, 0.0  ;;  %v2994_v36 = vmul.f32 0.2, %v2976_v30 }
 0x3c1   : > { %v3447_v40 = vpop.f32.mrb[16].mxu1  ;;  %v2998_v43 = vsel %vm2990_vm8, %v2976_v30, %v2994_v36  ;;  %vm2991_vm9 = vcmp.gt.f32.partialorder %v2979_v35, 0.0  ;;  %v2995_v45 = vmul.f32 0.2, %v2979_v35 }
 0x3c2   : > { %v3448_v47 = vpop.f32.mrb[17].mxu1  ;;  %v3009_v49 = vmul.f32 %v3421_v56, %v2998_v43 }
 0x3c3   : > { %v3449_v51 = vadd.f32 %v3448_v47, %v3447_v40  ;;  %v3450_v53 = vpop.f32.mrb[18].mxu1  ;;  %v2999_v54 = vsel %vm2991_vm9, %v2979_v35, %v2995_v45 }
 0x3c4   : > { %v3451_v32 = vpop.f32.mrb[19].mxu1  ;;  %3013 = vadd.xlane.f32.xlu0 %v3009_v49  ;;  %v3010_v33 = vmul.f32 %v3421_v56, %v2999_v54 }
 0x3c5   : > { %v2984_v34 = vadd.f32 %v3449_v51, %v3404_v25  ;;  %v3452_v37 = vadd.f32 %v3451_v32, %v3450_v53 }
 0x3c7   : > { %v2987_v39 = vadd.f32 %v3452_v37, %v3404_v25  ;;  %vm2992_vm10 = vcmp.gt.f32.partialorder %v2984_v34, 0.0  ;;  %v2996_v42 = vmul.f32 0.2, %v2984_v34 }
 0x3c8   : > { %3015 = vadd.xlane.f32.xlu0 %v3010_v33 }
 0x3c9   : > { %v3000_v44 = vsel %vm2992_vm10, %v2984_v34, %v2996_v42  ;;  %vm2993_vm11 = vcmp.gt.f32.partialorder %v2987_v39, 0.0  ;;  %v2997_v46 = vmul.f32 0.2, %v2987_v39 }
 0x3ca   : > { %v3011_v48 = vmul.f32 %v3421_v56, %v3000_v44 }
 0x3cb   : > { %v3001_v55 = vsel %vm2993_vm11, %v2987_v39, %v2997_v46 }
 0x3cc   : > { %3017 = vadd.xlane.f32.xlu1 %v3011_v48  ;;  %v3012_v57 = vmul.f32 %v3421_v56, %v3001_v55 }
 0x3d0   : > { %3019 = vadd.xlane.f32.xlu1 %v3012_v57 }
 0x451   : > { %v3014_v59 = vpop.xlane.xlu0 %3013 }
 0x452   : > { %v3028_v60 = vadd.f32 %v3422_v58, %v3014_v59 }
 0x454   : > { %3033 = vst.msk [vmem:[%s339_s30] sm:$0xff] %vm3032_vm12, %v3028_v60 }
 0x455   : > { %v3016_v61 = vpop.xlane.xlu0 %3015 }
 0x456   : > { %v3029_v62 = vadd.f32 %v3422_v58, %v3016_v61 }
 0x458   : > { %3034 = vst.msk [vmem:[%s339_s30 + $0x8] sm:$0xff] %vm3032_vm12, %v3029_v62 }
 0x459   : > { %v3018_v63 = vpop.xlane.xlu1 %3017 }
 0x45a   : > { %v3030_v0 = vadd.f32 %v3422_v58, %v3018_v63 }
 0x45c   : > { %3035 = vst.msk [vmem:[%s339_s30 + $0x10] sm:$0xff] %vm3032_vm12, %v3030_v0 }
 0x45d   : > { %v3020_v1 = vpop.xlane.xlu1 %3019 }
 0x45e   : > { %v3031_v2 = vadd.f32 %v3422_v58, %v3020_v1 }
 0x460   : > { %3036 = vst.msk [vmem:[%s339_s30 + $0x18] sm:$0xff] %vm3032_vm12, %v3031_v2 }
 0x461 PF: > { %s21_s11 = sadd.s32 1, %s4034_s11  }
 0x462   : > { %p18_p4 = scmp.ge.s32.totalorder %s21_s11, 4  }
 0x464   :  { %20 = sbr.rel (!%p18_p4) target bundleno = 3 (0x3), region = 86 }

</bundles_post_ra>
